<compile_context>
chip_gen: v5e
topology: v5e:2x2
jax: 0.10.0
libtpu: 0.0.40
codegen_flags: <defaults>
</compile_context>

<pallas_src>
import jax
import jax.numpy as jnp
from jax.experimental import pallas as pl
from jax.experimental.pallas import tpu as pltpu

MATMUL_DTYPE = jnp.bfloat16   # MXU operand dtype; accumulation stays f32.
_CONV_TN_CAP = 1024           # conv N-tile: multiple of 256 (v6e/v7x) and 128 (v5e).


# ---------------------------------------------------------------------------
# Kernel 1: fused conv (im2col matmul) + bias + ReLU + MaxPool2d(2, 2).
# Batch is folded into the matmul N axis; pool parity groups arrive
# pre-separated, so pooling is an elementwise max of 4 matmul results.
# ---------------------------------------------------------------------------
def _conv_relu_pool_kernel(p_ref, w_ref, b_ref, o_ref):
    # p_ref: (4, K, TN) bf16  im2col patches, one group per 2x2-pool position
    # w_ref: (OC, K)    bf16  conv weight as a matrix (K = C*kh*kw, unpadded)
    # b_ref: (OC, 1)    f32   bias
    # o_ref: (OC, TN)   bf16  pooled activations
    w = w_ref[...]

    def mm(g):  # (OC, K) @ (K, TN) -> (OC, TN) f32 on the MXU
        return jnp.dot(w, p_ref[g], preferred_element_type=jnp.float32)

    # TODO(synk): a single dot over group-concatenated N would cut MXU-issue
    # overhead a bit more; with TN >= 128-wide tiles the 4-dot form is cheap.
    y = jnp.maximum(jnp.maximum(mm(0), mm(1)), jnp.maximum(mm(2), mm(3)))
    y = y + b_ref[...]                      # bias/ReLU commute with the max
    o_ref[...] = jnp.maximum(y, 0.0).astype(o_ref.dtype)


def _pooled_patches(x, kh, kw):
    """im2col pre-grouped by 2x2-pool parity, batch folded into the N axis.

    x: (C, B, H, W) bf16 -> (4, C*kh*kw, B*PH*PW) bf16, PH = (H - kh + 1) // 2.
    K ordering (c, i, j) matches w.reshape(OC, C*kh*kw); N ordering (b, ph, pw).
    No K zero-padding (Mosaic masks the MXU feed for non-128 K).
    """
    C, B, H, W = x.shape
    OH, OW = H - kh + 1, W - kw + 1
    PH, PW = OH // 2, OW // 2
    groups = []
    for a in range(2):
        for b in range(2):
            cols = []
            for i in range(kh):
                for j in range(kw):
                    sl = jax.lax.slice(
                        x,
                        (0, 0, a + i, b + j),
                        (C, B, a + i + 2 * PH - 1, b + j + 2 * PW - 1),
                        (1, 1, 2, 2),
                    )                                    # (C, B, PH, PW)
                    cols.append(sl)
            g = jnp.stack(cols, axis=1)                  # (C, kh*kw, B, PH, PW)
            groups.append(g.reshape(C * kh * kw, B * PH * PW))
    return jnp.stack(groups, axis=0), PH, PW             # (4, K, B*PH*PW)


def conv_relu_pool(x, w_mat, b_col, kh, kw):
    """Fused valid conv (stride 1) + bias + ReLU + MaxPool2d(2, 2).

    x:     (C, B, H, W) bf16, channel-major ("CNHW") activations
    w_mat: (OC, C*kh*kw) bf16
    b_col: (OC, 1) f32
    returns (OC, B, PH, PW) bf16
    """
    C, B, H, W = x.shape
    OC, K = w_mat.shape
    assert K == C * kh * kw
    patches, PH, PW = _pooled_patches(x, kh, kw)
    ntot = B * PH * PW
    tn = ntot if ntot <= _CONV_TN_CAP else _CONV_TN_CAP
    out = pl.pallas_call(
        _conv_relu_pool_kernel,
        grid=(pl.cdiv(ntot, tn),),
        in_specs=[
            pl.BlockSpec((4, K, tn), lambda n: (0, 0, n)),
            pl.BlockSpec((OC, K), lambda n: (0, 0)),
            pl.BlockSpec((OC, 1), lambda n: (0, 0)),
        ],
        out_specs=pl.BlockSpec((OC, tn), lambda n: (0, n)),
        out_shape=jax.ShapeDtypeStruct((OC, ntot), MATMUL_DTYPE),
        compiler_params=pltpu.CompilerParams(dimension_semantics=("parallel",)),
    )(patches, w_mat, b_col)
    return out.reshape(OC, B, PH, PW)


# ---------------------------------------------------------------------------
# Kernel 2: fc1 + ReLU + fc2 + ReLU + fc3 fused; intermediates stay in VMEM.
# Tiled over M so large batches shard across both v7x TensorCores.
# ---------------------------------------------------------------------------
def _fc3_fused_kernel(x_ref, w1_ref, b1_ref, w2_ref, b2_ref, w3_ref, b3_ref, o_ref):
    h = jnp.dot(x_ref[...], w1_ref[...], preferred_element_type=jnp.float32)
    h = jnp.maximum(h + b1_ref[...], 0.0)
    h = jnp.dot(h.astype(MATMUL_DTYPE), w2_ref[...], preferred_element_type=jnp.float32)
    h = jnp.maximum(h + b2_ref[...], 0.0)
    h = jnp.dot(h.astype(MATMUL_DTYPE), w3_ref[...], preferred_element_type=jnp.float32)
    o_ref[...] = (h + b3_ref[...]).astype(o_ref.dtype)


def fc3_fused(x, w1, b1, w2, b2, w3, b3):
    B, D = x.shape
    n_out = w3.shape[1]
    x = x.astype(MATMUL_DTYPE)
    tm = B if B <= 128 else 128
    const = lambda a: pl.BlockSpec(a.shape, lambda m: (0,) * a.ndim)
    return pl.pallas_call(
        _fc3_fused_kernel,
        grid=(pl.cdiv(B, tm),),
        in_specs=[pl.BlockSpec((tm, D), lambda m: (m, 0)),
                  const(w1), const(b1), const(w2), const(b2), const(w3), const(b3)],
        out_specs=pl.BlockSpec((tm, n_out), lambda m: (m, 0)),
        out_shape=jax.ShapeDtypeStruct((B, n_out), jnp.float32),
        compiler_params=pltpu.CompilerParams(dimension_semantics=("parallel",)),
    )(x, w1, b1, w2, b2, w3, b3)


# ---------------------------------------------------------------------------
# Parameters
# ---------------------------------------------------------------------------
def init_params(key, n_classes=10):
    """Deterministic PyTorch-default-style uniform init, PyTorch layouts."""
    def uni(k, shape, fan_in):
        bound = 1.0 / (fan_in ** 0.5)
        return jax.random.uniform(k, shape, jnp.float32, -bound, bound)

    ks = jax.random.split(key, 10)
    return {
        "conv1_w": uni(ks[0], (16, 3, 5, 5), 3 * 5 * 5),
        "conv1_b": uni(ks[1], (16,), 3 * 5 * 5),
        "conv2_w": uni(ks[2], (32, 16, 5, 5), 16 * 5 * 5),
        "conv2_b": uni(ks[3], (32,), 16 * 5 * 5),
        "fc1_w": uni(ks[4], (120, 32 * 5 * 5), 32 * 5 * 5),   # PyTorch (out, in)
        "fc1_b": uni(ks[5], (120,), 32 * 5 * 5),
        "fc2_w": uni(ks[6], (84, 120), 120),
        "fc2_b": uni(ks[7], (84,), 120),
        "fc3_w": uni(ks[8], (n_classes, 84), 84),
        "fc3_b": uni(ks[9], (n_classes,), 84),
    }


def prepare_params(p):
    """One-time conversion to kernel-ready layout (reshape/transpose/bf16)."""
    def conv_mat(w):
        oc, ic, kh, kw = w.shape
        return w.reshape(oc, ic * kh * kw).astype(MATMUL_DTYPE)   # no K padding

    return {
        "conv1_w": conv_mat(p["conv1_w"]),
        "conv1_b": p["conv1_b"].reshape(-1, 1).astype(jnp.float32),
        "conv2_w": conv_mat(p["conv2_w"]),
        "conv2_b": p["conv2_b"].reshape(-1, 1).astype(jnp.float32),
        "fc1_w": p["fc1_w"].T.astype(MATMUL_DTYPE),               # (in, out)
        "fc1_b": p["fc1_b"].reshape(1, -1).astype(jnp.float32),
        "fc2_w": p["fc2_w"].T.astype(MATMUL_DTYPE),
        "fc2_b": p["fc2_b"].reshape(1, -1).astype(jnp.float32),
        "fc3_w": p["fc3_w"].T.astype(MATMUL_DTYPE),
        "fc3_b": p["fc3_b"].reshape(1, -1).astype(jnp.float32),
    }


# ---------------------------------------------------------------------------
# Forward pass (mirrors Net.forward)
# ---------------------------------------------------------------------------
def net_forward(params, x):
    # x: (B, 3, 32, 32) f32, NCHW (32x32 so fc1's 32*5*5 flatten matches Net).
    B = x.shape[0]
    x = jnp.transpose(x.astype(MATMUL_DTYPE), (1, 0, 2, 3))             # (3, B, 32, 32)
    x = conv_relu_pool(x, params["conv1_w"], params["conv1_b"], 5, 5)   # (16, B, 14, 14)
    x = conv_relu_pool(x, params["conv2_w"], params["conv2_b"], 5, 5)   # (32, B, 5, 5)
    x = jnp.transpose(x, (1, 0, 2, 3)).reshape(B, -1)                   # (B, 800) (c,h,w)
    return fc3_fused(x, params["fc1_w"], params["fc1_b"],
                     params["fc2_w"], params["fc2_b"],
                     params["fc3_w"], params["fc3_b"])                  # (B, n_classes)


if __name__ == "__main__":
    key = jax.random.PRNGKey(0)
    pkey, xkey = jax.random.split(key)
    params = prepare_params(init_params(pkey, n_classes=10))

    # Input must be 32x32 spatial so fc1's 32*5*5 flatten matches the module.
    x = jax.random.normal(xkey, (2, 3, 32, 32), dtype=jnp.float32)

    fwd = jax.jit(net_forward)
    out = jax.block_until_ready(fwd(params, x))
    assert out.shape == (2, 10), out.shape
    assert out.dtype == jnp.float32
    print("KERNEL_OK")
</pallas_src>

<mosaic_0001>
module attributes {stable_mosaic.version = 11 : i64} {
  func.func @_conv_relu_pool_kernel(%arg0: i32, %arg1: memref<4x75x392xbf16, #tpu.memory_space<vmem>>, %arg2: memref<16x75xbf16, #tpu.memory_space<vmem>>, %arg3: memref<16x1xf32, #tpu.memory_space<vmem>>, %arg4: memref<16x392xbf16, #tpu.memory_space<vmem>>) attributes {dimension_semantics = [#tpu.dimension_semantics<parallel>], iteration_bounds = array<i64: 1>, scalar_prefetch = 0 : i64, scratch_operands = 0 : i64, tpu.core_type = #tpu.core_type<tc>, window_params = [{transform_indices = @transform_0, window_bounds = array<i64: 4, 75, 392>}, {pipeline_mode = #tpu.pipeline_mode<synchronous>, transform_indices = @transform_1, window_bounds = array<i64: 16, 75>}, {pipeline_mode = #tpu.pipeline_mode<synchronous>, transform_indices = @transform_2, window_bounds = array<i64: 16, 1>}, {transform_indices = @transform_3, window_bounds = array<i64: 16, 392>}]} {
    %c0 = arith.constant 0 : index
    %c0_0 = arith.constant 0 : index
    %0 = vector.load %arg2[%c0, %c0_0] : memref<16x75xbf16, #tpu.memory_space<vmem>>, vector<16x75xbf16>
    %c0_1 = arith.constant 0 : index
    %c0_2 = arith.constant 0 : index
    %c0_3 = arith.constant 0 : index
    %1 = vector.load %arg1[%c0_1, %c0_2, %c0_3] : memref<4x75x392xbf16, #tpu.memory_space<vmem>>, vector<1x75x392xbf16>
    %2 = vector.shape_cast %1 : vector<1x75x392xbf16> to vector<75x392xbf16>
    %cst = arith.constant dense<0.000000e+00> : vector<16x392xf32>
    %3 = tpu.matmul %0, %2, %cst {dimension_numbers = #tpu.dot_dimension_numbers<[1], [0], [0], [1], [0, 0, 1, 1], [], []>} : vector<16x75xbf16>, vector<75x392xbf16>, vector<16x392xf32> -> vector<16x392xf32>
    %c1 = arith.constant 1 : index
    %c0_4 = arith.constant 0 : index
    %c0_5 = arith.constant 0 : index
    %4 = vector.load %arg1[%c1, %c0_4, %c0_5] : memref<4x75x392xbf16, #tpu.memory_space<vmem>>, vector<1x75x392xbf16>
    %5 = vector.shape_cast %4 : vector<1x75x392xbf16> to vector<75x392xbf16>
    %cst_6 = arith.constant dense<0.000000e+00> : vector<16x392xf32>
    %6 = tpu.matmul %0, %5, %cst_6 {dimension_numbers = #tpu.dot_dimension_numbers<[1], [0], [0], [1], [0, 0, 1, 1], [], []>} : vector<16x75xbf16>, vector<75x392xbf16>, vector<16x392xf32> -> vector<16x392xf32>
    %7 = arith.maximumf %3, %6 : vector<16x392xf32>
    %c2 = arith.constant 2 : index
    %c0_7 = arith.constant 0 : index
    %c0_8 = arith.constant 0 : index
    %8 = vector.load %arg1[%c2, %c0_7, %c0_8] : memref<4x75x392xbf16, #tpu.memory_space<vmem>>, vector<1x75x392xbf16>
    %9 = vector.shape_cast %8 : vector<1x75x392xbf16> to vector<75x392xbf16>
    %cst_9 = arith.constant dense<0.000000e+00> : vector<16x392xf32>
    %10 = tpu.matmul %0, %9, %cst_9 {dimension_numbers = #tpu.dot_dimension_numbers<[1], [0], [0], [1], [0, 0, 1, 1], [], []>} : vector<16x75xbf16>, vector<75x392xbf16>, vector<16x392xf32> -> vector<16x392xf32>
    %c3 = arith.constant 3 : index
    %c0_10 = arith.constant 0 : index
    %c0_11 = arith.constant 0 : index
    %11 = vector.load %arg1[%c3, %c0_10, %c0_11] : memref<4x75x392xbf16, #tpu.memory_space<vmem>>, vector<1x75x392xbf16>
    %12 = vector.shape_cast %11 : vector<1x75x392xbf16> to vector<75x392xbf16>
    %cst_12 = arith.constant dense<0.000000e+00> : vector<16x392xf32>
    %13 = tpu.matmul %0, %12, %cst_12 {dimension_numbers = #tpu.dot_dimension_numbers<[1], [0], [0], [1], [0, 0, 1, 1], [], []>} : vector<16x75xbf16>, vector<75x392xbf16>, vector<16x392xf32> -> vector<16x392xf32>
    %14 = arith.maximumf %10, %13 : vector<16x392xf32>
    %15 = arith.maximumf %7, %14 : vector<16x392xf32>
    %c0_13 = arith.constant 0 : index
    %c0_14 = arith.constant 0 : index
    %16 = vector.load %arg3[%c0_13, %c0_14] : memref<16x1xf32, #tpu.memory_space<vmem>>, vector<16x1xf32>
    %17 = vector.broadcast %16 : vector<16x1xf32> to vector<16x392xf32>
    %18 = arith.addf %15, %17 : vector<16x392xf32>
    %cst_15 = arith.constant 0.000000e+00 : f32
    %19 = vector.broadcast %cst_15 : f32 to vector<16x392xf32>
    %20 = arith.maximumf %18, %19 : vector<16x392xf32>
    %21 = arith.truncf %20 : vector<16x392xf32> to vector<16x392xbf16>
    %c0_16 = arith.constant 0 : index
    %c0_17 = arith.constant 0 : index
    %22 = vector.load %arg4[%c0_16, %c0_17] : memref<16x392xbf16, #tpu.memory_space<vmem>>, vector<16x392xbf16>
    tpu.vector_store %arg4[%c0_16, %c0_17], %21 {strides = array<i32>} : memref<16x392xbf16, #tpu.memory_space<vmem>>, vector<16x392xbf16>,
    return
  }
  func.func @transform_0(%arg0: i32) -> (i32, i32, i32) {
    %c0_i32 = arith.constant 0 : i32
    %c0_i32_0 = arith.constant 0 : i32
    %c0_i32_1 = arith.constant 0 : i32
    return %c0_i32, %c0_i32_0, %arg0 : i32, i32, i32
  }
  func.func @transform_1(%arg0: i32) -> (i32, i32) {
    %c0_i32 = arith.constant 0 : i32
    %c0_i32_0 = arith.constant 0 : i32
    %c0_i32_1 = arith.constant 0 : i32
    return %c0_i32, %c0_i32_0 : i32, i32
  }
  func.func @transform_2(%arg0: i32) -> (i32, i32) {
    %c0_i32 = arith.constant 0 : i32
    %c0_i32_0 = arith.constant 0 : i32
    %c0_i32_1 = arith.constant 0 : i32
    return %c0_i32, %c0_i32_0 : i32, i32
  }
  func.func @transform_3(%arg0: i32) -> (i32, i32) {
    %c0_i32 = arith.constant 0 : i32
    %c0_i32_0 = arith.constant 0 : i32
    return %c0_i32, %arg0 : i32, i32
  }
}

module attributes {stable_mosaic.version = 11 : i64} {
  func.func @_conv_relu_pool_kernel(%arg0: i32, %arg1: memref<4x400x50xbf16, #tpu.memory_space<vmem>>, %arg2: memref<32x400xbf16, #tpu.memory_space<vmem>>, %arg3: memref<32x1xf32, #tpu.memory_space<vmem>>, %arg4: memref<32x50xbf16, #tpu.memory_space<vmem>>) attributes {dimension_semantics = [#tpu.dimension_semantics<parallel>], iteration_bounds = array<i64: 1>, scalar_prefetch = 0 : i64, scratch_operands = 0 : i64, tpu.core_type = #tpu.core_type<tc>, window_params = [{transform_indices = @transform_0, window_bounds = array<i64: 4, 400, 50>}, {pipeline_mode = #tpu.pipeline_mode<synchronous>, transform_indices = @transform_1, window_bounds = array<i64: 32, 400>}, {pipeline_mode = #tpu.pipeline_mode<synchronous>, transform_indices = @transform_2, window_bounds = array<i64: 32, 1>}, {transform_indices = @transform_3, window_bounds = array<i64: 32, 50>}]} {
    %c0 = arith.constant 0 : index
    %c0_0 = arith.constant 0 : index
    %0 = vector.load %arg2[%c0, %c0_0] : memref<32x400xbf16, #tpu.memory_space<vmem>>, vector<32x400xbf16>
    %c0_1 = arith.constant 0 : index
    %c0_2 = arith.constant 0 : index
    %c0_3 = arith.constant 0 : index
    %1 = vector.load %arg1[%c0_1, %c0_2, %c0_3] : memref<4x400x50xbf16, #tpu.memory_space<vmem>>, vector<1x400x50xbf16>
    %2 = vector.shape_cast %1 : vector<1x400x50xbf16> to vector<400x50xbf16>
    %cst = arith.constant dense<0.000000e+00> : vector<32x50xf32>
    %3 = tpu.matmul %0, %2, %cst {dimension_numbers = #tpu.dot_dimension_numbers<[1], [0], [0], [1], [0, 0, 1, 1], [], []>} : vector<32x400xbf16>, vector<400x50xbf16>, vector<32x50xf32> -> vector<32x50xf32>
    %c1 = arith.constant 1 : index
    %c0_4 = arith.constant 0 : index
    %c0_5 = arith.constant 0 : index
    %4 = vector.load %arg1[%c1, %c0_4, %c0_5] : memref<4x400x50xbf16, #tpu.memory_space<vmem>>, vector<1x400x50xbf16>
    %5 = vector.shape_cast %4 : vector<1x400x50xbf16> to vector<400x50xbf16>
    %cst_6 = arith.constant dense<0.000000e+00> : vector<32x50xf32>
    %6 = tpu.matmul %0, %5, %cst_6 {dimension_numbers = #tpu.dot_dimension_numbers<[1], [0], [0], [1], [0, 0, 1, 1], [], []>} : vector<32x400xbf16>, vector<400x50xbf16>, vector<32x50xf32> -> vector<32x50xf32>
    %7 = arith.maximumf %3, %6 : vector<32x50xf32>
    %c2 = arith.constant 2 : index
    %c0_7 = arith.constant 0 : index
    %c0_8 = arith.constant 0 : index
    %8 = vector.load %arg1[%c2, %c0_7, %c0_8] : memref<4x400x50xbf16, #tpu.memory_space<vmem>>, vector<1x400x50xbf16>
    %9 = vector.shape_cast %8 : vector<1x400x50xbf16> to vector<400x50xbf16>
    %cst_9 = arith.constant dense<0.000000e+00> : vector<32x50xf32>
    %10 = tpu.matmul %0, %9, %cst_9 {dimension_numbers = #tpu.dot_dimension_numbers<[1], [0], [0], [1], [0, 0, 1, 1], [], []>} : vector<32x400xbf16>, vector<400x50xbf16>, vector<32x50xf32> -> vector<32x50xf32>
    %c3 = arith.constant 3 : index
    %c0_10 = arith.constant 0 : index
    %c0_11 = arith.constant 0 : index
    %11 = vector.load %arg1[%c3, %c0_10, %c0_11] : memref<4x400x50xbf16, #tpu.memory_space<vmem>>, vector<1x400x50xbf16>
    %12 = vector.shape_cast %11 : vector<1x400x50xbf16> to vector<400x50xbf16>
    %cst_12 = arith.constant dense<0.000000e+00> : vector<32x50xf32>
    %13 = tpu.matmul %0, %12, %cst_12 {dimension_numbers = #tpu.dot_dimension_numbers<[1], [0], [0], [1], [0, 0, 1, 1], [], []>} : vector<32x400xbf16>, vector<400x50xbf16>, vector<32x50xf32> -> vector<32x50xf32>
    %14 = arith.maximumf %10, %13 : vector<32x50xf32>
    %15 = arith.maximumf %7, %14 : vector<32x50xf32>
    %c0_13 = arith.constant 0 : index
    %c0_14 = arith.constant 0 : index
    %16 = vector.load %arg3[%c0_13, %c0_14] : memref<32x1xf32, #tpu.memory_space<vmem>>, vector<32x1xf32>
    %17 = vector.broadcast %16 : vector<32x1xf32> to vector<32x50xf32>
    %18 = arith.addf %15, %17 : vector<32x50xf32>
    %cst_15 = arith.constant 0.000000e+00 : f32
    %19 = vector.broadcast %cst_15 : f32 to vector<32x50xf32>
    %20 = arith.maximumf %18, %19 : vector<32x50xf32>
    %21 = arith.truncf %20 : vector<32x50xf32> to vector<32x50xbf16>
    %c0_16 = arith.constant 0 : index
    %c0_17 = arith.constant 0 : index
    %22 = vector.load %arg4[%c0_16, %c0_17] : memref<32x50xbf16, #tpu.memory_space<vmem>>, vector<32x50xbf16>
    tpu.vector_store %arg4[%c0_16, %c0_17], %21 {strides = array<i32>} : memref<32x50xbf16, #tpu.memory_space<vmem>>, vector<32x50xbf16>,
    return
  }
  func.func @transform_0(%arg0: i32) -> (i32, i32, i32) {
    %c0_i32 = arith.constant 0 : i32
    %c0_i32_0 = arith.constant 0 : i32
    %c0_i32_1 = arith.constant 0 : i32
    return %c0_i32, %c0_i32_0, %arg0 : i32, i32, i32
  }
  func.func @transform_1(%arg0: i32) -> (i32, i32) {
    %c0_i32 = arith.constant 0 : i32
    %c0_i32_0 = arith.constant 0 : i32
    %c0_i32_1 = arith.constant 0 : i32
    return %c0_i32, %c0_i32_0 : i32, i32
  }
  func.func @transform_2(%arg0: i32) -> (i32, i32) {
    %c0_i32 = arith.constant 0 : i32
    %c0_i32_0 = arith.constant 0 : i32
    %c0_i32_1 = arith.constant 0 : i32
    return %c0_i32, %c0_i32_0 : i32, i32
  }
  func.func @transform_3(%arg0: i32) -> (i32, i32) {
    %c0_i32 = arith.constant 0 : i32
    %c0_i32_0 = arith.constant 0 : i32
    return %c0_i32, %arg0 : i32, i32
  }
}

module attributes {stable_mosaic.version = 11 : i64} {
  func.func @_fc3_fused_kernel(%arg0: i32, %arg1: memref<2x800xbf16, #tpu.memory_space<vmem>>, %arg2: memref<800x120xbf16, #tpu.memory_space<vmem>>, %arg3: memref<1x120xf32, #tpu.memory_space<vmem>>, %arg4: memref<120x84xbf16, #tpu.memory_space<vmem>>, %arg5: memref<1x84xf32, #tpu.memory_space<vmem>>, %arg6: memref<84x10xbf16, #tpu.memory_space<vmem>>, %arg7: memref<1x10xf32, #tpu.memory_space<vmem>>, %arg8: memref<2x10xf32, #tpu.memory_space<vmem>>) attributes {dimension_semantics = [#tpu.dimension_semantics<parallel>], iteration_bounds = array<i64: 1>, scalar_prefetch = 0 : i64, scratch_operands = 0 : i64, tpu.core_type = #tpu.core_type<tc>, window_params = [{transform_indices = @transform_0, window_bounds = array<i64: 2, 800>}, {pipeline_mode = #tpu.pipeline_mode<synchronous>, transform_indices = @transform_1, window_bounds = array<i64: 800, 120>}, {pipeline_mode = #tpu.pipeline_mode<synchronous>, transform_indices = @transform_2, window_bounds = array<i64: 1, 120>}, {pipeline_mode = #tpu.pipeline_mode<synchronous>, transform_indices = @transform_3, window_bounds = array<i64: 120, 84>}, {pipeline_mode = #tpu.pipeline_mode<synchronous>, transform_indices = @transform_4, window_bounds = array<i64: 1, 84>}, {pipeline_mode = #tpu.pipeline_mode<synchronous>, transform_indices = @transform_5, window_bounds = array<i64: 84, 10>}, {pipeline_mode = #tpu.pipeline_mode<synchronous>, transform_indices = @transform_6, window_bounds = array<i64: 1, 10>}, {transform_indices = @transform_7, window_bounds = array<i64: 2, 10>}]} {
    %c0 = arith.constant 0 : index
    %c0_0 = arith.constant 0 : index
    %0 = vector.load %arg1[%c0, %c0_0] : memref<2x800xbf16, #tpu.memory_space<vmem>>, vector<2x800xbf16>
    %c0_1 = arith.constant 0 : index
    %c0_2 = arith.constant 0 : index
    %1 = vector.load %arg2[%c0_1, %c0_2] : memref<800x120xbf16, #tpu.memory_space<vmem>>, vector<800x120xbf16>
    %cst = arith.constant dense<0.000000e+00> : vector<2x120xf32>
    %2 = tpu.matmul %0, %1, %cst {dimension_numbers = #tpu.dot_dimension_numbers<[1], [0], [0], [1], [0, 0, 1, 1], [], []>} : vector<2x800xbf16>, vector<800x120xbf16>, vector<2x120xf32> -> vector<2x120xf32>
    %c0_3 = arith.constant 0 : index
    %c0_4 = arith.constant 0 : index
    %3 = vector.load %arg3[%c0_3, %c0_4] : memref<1x120xf32, #tpu.memory_space<vmem>>, vector<1x120xf32>
    %4 = vector.broadcast %3 : vector<1x120xf32> to vector<2x120xf32>
    %5 = arith.addf %2, %4 : vector<2x120xf32>
    %cst_5 = arith.constant 0.000000e+00 : f32
    %6 = vector.broadcast %cst_5 : f32 to vector<2x120xf32>
    %7 = arith.maximumf %5, %6 : vector<2x120xf32>
    %8 = arith.truncf %7 : vector<2x120xf32> to vector<2x120xbf16>
    %c0_6 = arith.constant 0 : index
    %c0_7 = arith.constant 0 : index
    %9 = vector.load %arg4[%c0_6, %c0_7] : memref<120x84xbf16, #tpu.memory_space<vmem>>, vector<120x84xbf16>
    %cst_8 = arith.constant dense<0.000000e+00> : vector<2x84xf32>
    %10 = tpu.matmul %8, %9, %cst_8 {dimension_numbers = #tpu.dot_dimension_numbers<[1], [0], [0], [1], [0, 0, 1, 1], [], []>} : vector<2x120xbf16>, vector<120x84xbf16>, vector<2x84xf32> -> vector<2x84xf32>
    %c0_9 = arith.constant 0 : index
    %c0_10 = arith.constant 0 : index
    %11 = vector.load %arg5[%c0_9, %c0_10] : memref<1x84xf32, #tpu.memory_space<vmem>>, vector<1x84xf32>
    %12 = vector.broadcast %11 : vector<1x84xf32> to vector<2x84xf32>
    %13 = arith.addf %10, %12 : vector<2x84xf32>
    %cst_11 = arith.constant 0.000000e+00 : f32
    %14 = vector.broadcast %cst_11 : f32 to vector<2x84xf32>
    %15 = arith.maximumf %13, %14 : vector<2x84xf32>
    %16 = arith.truncf %15 : vector<2x84xf32> to vector<2x84xbf16>
    %c0_12 = arith.constant 0 : index
    %c0_13 = arith.constant 0 : index
    %17 = vector.load %arg6[%c0_12, %c0_13] : memref<84x10xbf16, #tpu.memory_space<vmem>>, vector<84x10xbf16>
    %cst_14 = arith.constant dense<0.000000e+00> : vector<2x10xf32>
    %18 = tpu.matmul %16, %17, %cst_14 {dimension_numbers = #tpu.dot_dimension_numbers<[1], [0], [0], [1], [0, 0, 1, 1], [], []>} : vector<2x84xbf16>, vector<84x10xbf16>, vector<2x10xf32> -> vector<2x10xf32>
    %c0_15 = arith.constant 0 : index
    %c0_16 = arith.constant 0 : index
    %19 = vector.load %arg7[%c0_15, %c0_16] : memref<1x10xf32, #tpu.memory_space<vmem>>, vector<1x10xf32>
    %20 = vector.broadcast %19 : vector<1x10xf32> to vector<2x10xf32>
    %21 = arith.addf %18, %20 : vector<2x10xf32>
    %c0_17 = arith.constant 0 : index
    %c0_18 = arith.constant 0 : index
    %22 = vector.load %arg8[%c0_17, %c0_18] : memref<2x10xf32, #tpu.memory_space<vmem>>, vector<2x10xf32>
    tpu.vector_store %arg8[%c0_17, %c0_18], %21 {strides = array<i32>} : memref<2x10xf32, #tpu.memory_space<vmem>>, vector<2x10xf32>,
    return
  }
  func.func @transform_0(%arg0: i32) -> (i32, i32) {
    %c0_i32 = arith.constant 0 : i32
    %c0_i32_0 = arith.constant 0 : i32
    return %arg0, %c0_i32 : i32, i32
  }
  func.func @transform_1(%arg0: i32) -> (i32, i32) {
    %c0_i32 = arith.constant 0 : i32
    %c0_i32_0 = arith.constant 0 : i32
    %c0_i32_1 = arith.constant 0 : i32
    return %c0_i32, %c0_i32_0 : i32, i32
  }
  func.func @transform_2(%arg0: i32) -> (i32, i32) {
    %c0_i32 = arith.constant 0 : i32
    %c0_i32_0 = arith.constant 0 : i32
    %c0_i32_1 = arith.constant 0 : i32
    return %c0_i32, %c0_i32_0 : i32, i32
  }
  func.func @transform_3(%arg0: i32) -> (i32, i32) {
    %c0_i32 = arith.constant 0 : i32
    %c0_i32_0 = arith.constant 0 : i32
    %c0_i32_1 = arith.constant 0 : i32
    return %c0_i32, %c0_i32_0 : i32, i32
  }
  func.func @transform_4(%arg0: i32) -> (i32, i32) {
    %c0_i32 = arith.constant 0 : i32
    %c0_i32_0 = arith.constant 0 : i32
    %c0_i32_1 = arith.constant 0 : i32
    return %c0_i32, %c0_i32_0 : i32, i32
  }
  func.func @transform_5(%arg0: i32) -> (i32, i32) {
    %c0_i32 = arith.constant 0 : i32
    %c0_i32_0 = arith.constant 0 : i32
    %c0_i32_1 = arith.constant 0 : i32
    return %c0_i32, %c0_i32_0 : i32, i32
  }
  func.func @transform_6(%arg0: i32) -> (i32, i32) {
    %c0_i32 = arith.constant 0 : i32
    %c0_i32_0 = arith.constant 0 : i32
    %c0_i32_1 = arith.constant 0 : i32
    return %c0_i32, %c0_i32_0 : i32, i32
  }
  func.func @transform_7(%arg0: i32) -> (i32, i32) {
    %c0_i32 = arith.constant 0 : i32
    %c0_i32_0 = arith.constant 0 : i32
    return %arg0, %c0_i32 : i32, i32
  }
}

</mosaic_0001>

<bundles_post_ra>
// kernel: net_forward.3
= control target key start
LH: loop header
LB: loop body
LE: loop exit
PB: predicated region body
PF: predicated region fallthrough
CT: control target
= control target key end

     0   :  { %vm142_vm0 = vcmask 1044480   ;;  %vm143_vm1 = vcmask 1045504   ;;  %v1320_v2 = vmov 65535   ;;  %vm138_vm2 = vcmask 613376   ;;  %s1915_s0 = inlined_call_operand.vmem [shape: bf16[4,75,392], index: 0, kind: input, shape index: {}]   ;;  %s1916_s1 = inlined_call_operand.vmem [shape: bf16[16,75], index: 1, kind: input, shape index: {}]   ;;  %s1917_s2 = inlined_call_operand.vmem [shape: f32[16,1], index: 2, kind: input, shape index: {}]   ;;  %s1918_s3 = inlined_call_operand.vmem [shape: bf16[16,392], index: 3, kind: output, shape index: {}]  }
   0x1   :  { %v906_v0 = vld [vmem:[%s1915_s0 + $0x80] sm:$0xf]  ;;  %v1255_v1 = vld [vmem:[%s1915_s0 + $0x8c] sm:$0x30]  ;;  %v144_v3 = vsel %vm142_vm0, 4294967295, %v1320_v2  ;;  %vm826_vm3 = vcmask 1043456  }
   0x2   :  { %v907_v4 = vor.u32 %v1255_v1, %v906_v0  ;;  %v1348_v5 = vsel %vm143_vm1, %v144_v3, 0  ;;  %v1253_v6 = vld [vmem:[%s1915_s0 + $0x84] sm:$0xf]  ;;  %v908_v7 = vld [vmem:[%s1915_s0 + $0x90] sm:$0x30]  ;;  %vm827_vm4 = vcmask 64516  }
   0x3   :  { %v911_v8 = vor.u32 %v1253_v6, %v908_v7  ;;  %v914_v9 = vld [vmem:[%s1915_s0 + $0x88] sm:$0xf]  ;;  %v1256_v10 = vld [vmem:[%s1915_s0 + $0x94] sm:$0x30]  ;;  %v1254_v11 = vld [vmem:[%s1915_s0 + $0x8c] sm:$0xf] }
   0x4   :  { %v147_v12 = vand.u32 %v907_v4, %v1348_v5  ;;  %v915_v13 = vor.u32 %v1256_v10, %v914_v9  ;;  %v916_v14 = vld [vmem:[%s1915_s0 + $0x98] sm:$0x30]  ;;  %v890_v15 = vld [vmem:[%s1915_s0 + $0x60] sm:$0xf]  ;;  %v1251_v16 = vld [vmem:[%s1915_s0 + $0x6c] sm:$0xf0] }
   0x5   :  { %v150_v17 = vand.u32 %v911_v8, %v1348_v5  ;;  %v919_v18 = vor.u32 %v1254_v11, %v916_v14  ;;  %v1249_v19 = vld [vmem:[%s1915_s0 + $0x64] sm:$0xf]  ;;  %v892_v20 = vld [vmem:[%s1915_s0 + $0x70] sm:$0xf0]  ;;  %v898_v21 = vld [vmem:[%s1915_s0 + $0x68] sm:$0xf]  ;;  %v891_v23 = vor.u32 %v1251_v16, %v890_v15 }
   0x6   :  { %161 = vmatpush.bf16.msra.mxu0 %v147_v12  ;;  %v153_v22 = vand.u32 %v915_v13, %v1348_v5  ;;  %v1252_v24 = vld [vmem:[%s1915_s0 + $0x74] sm:$0xf0]  ;;  %v1250_v25 = vld [vmem:[%s1915_s0 + $0x6c] sm:$0xf]  ;;  %v900_v26 = vld [vmem:[%s1915_s0 + $0x78] sm:$0xf0]  ;;  %v895_v28 = vor.u32 %v1249_v19, %v892_v20 }
   0x7   :  { %175 = vmatpush.bf16.msra.mxu1 %v150_v17  ;;  %v156_v27 = vand.u32 %v919_v18, %v1348_v5  ;;  %v874_v29 = vld [vmem:[%s1915_s0 + $0x40] sm:$0xf]  ;;  %v1247_v30 = vld [vmem:[%s1915_s0 + $0x4c] sm:$0xf0]  ;;  %v899_v31 = vor.u32 %v1252_v24, %v898_v21  ;;  %v1245_v32 = vld [vmem:[%s1915_s0 + $0x44] sm:$0xf]  ;;  %v903_v34 = vor.u32 %v1250_v25, %v900_v26 }
   0x8   :  { %189 = vmatpush.bf16.msra.mxu2 %v153_v22  ;;  %v876_v33 = vld [vmem:[%s1915_s0 + $0x50] sm:$0xf0]  ;;  %v882_v35 = vld [vmem:[%s1915_s0 + $0x48] sm:$0xf]  ;;  %v1248_v36 = vld [vmem:[%s1915_s0 + $0x54] sm:$0xf0]  ;;  %v875_v37 = vor.u32 %v1247_v30, %v874_v29 }
   0x9   :  { %203 = vmatpush.bf16.msra.mxu3 %v156_v27  ;;  %v1246_v38 = vld [vmem:[%s1915_s0 + $0x4c] sm:$0xf]  ;;  %v884_v39 = vld [vmem:[%s1915_s0 + $0x58] sm:$0xf0]  ;;  %v879_v40 = vor.u32 %v1245_v32, %v876_v33  ;;  %v858_v41 = vld [vmem:[%s1915_s0 + $0x20] sm:$0xf]  ;;  %v883_v44 = vor.u32 %v1248_v36, %v882_v35 }
   0xa   :  { %162 = vmatpush.bf16.msra.mxu0 %v891_v23  ;;  %v1243_v42 = vld [vmem:[%s1915_s0 + $0x2c] sm:$0xf0]  ;;  %v1241_v43 = vld [vmem:[%s1915_s0 + $0x24] sm:$0xf]  ;;  %v860_v45 = vld [vmem:[%s1915_s0 + $0x30] sm:$0xf0]  ;;  %v887_v48 = vor.u32 %v1246_v38, %v884_v39 }
   0xb   :  { %176 = vmatpush.bf16.msra.mxu1 %v895_v28  ;;  %v866_v46 = vld [vmem:[%s1915_s0 + $0x28] sm:$0xf]  ;;  %v1244_v47 = vld [vmem:[%s1915_s0 + $0x34] sm:$0xf0]  ;;  %v1242_v49 = vld [vmem:[%s1915_s0 + $0x2c] sm:$0xf]  ;;  %v859_v52 = vor.u32 %v1243_v42, %v858_v41  ;;  %v863_v56 = vor.u32 %v1241_v43, %v860_v45 }
   0xc   :  { %190 = vmatpush.bf16.msra.mxu2 %v899_v31  ;;  %v868_v50 = vld [vmem:[%s1915_s0 + $0x38] sm:$0xf0]  ;;  %v842_v51 = vld [vmem:[%s1915_s0] sm:$0xf]  ;;  %v1239_v53 = vld [vmem:[%s1915_s0 + $0xc] sm:$0xf0]  ;;  %v867_v61 = vor.u32 %v1244_v47, %v866_v46 }
   0xd   :  { %204 = vmatpush.bf16.msra.mxu3 %v903_v34  ;;  %v1237_v54 = vld [vmem:[%s1915_s0 + $0x4] sm:$0xf]  ;;  %v844_v55 = vld [vmem:[%s1915_s0 + $0x10] sm:$0xf0]  ;;  %v850_v57 = vld [vmem:[%s1915_s0 + $0x8] sm:$0xf]  ;;  %v871_v2 = vor.u32 %v1242_v49, %v868_v50  ;;  %v843_v9 = vor.u32 %v1239_v53, %v842_v51 }
   0xe   :  { %163 = vmatpush.bf16.msra.mxu0 %v875_v37  ;;  %v1010_v58 = vld [vmem:[%s1915_s0 + $0x120] sm:$0xf]  ;;  %v1275_v59 = vld [vmem:[%s1915_s0 + $0x12c] sm:$0x30]  ;;  %v1273_v60 = vld [vmem:[%s1915_s0 + $0x124] sm:$0xf]  ;;  %v847_v13 = vor.u32 %v1237_v54, %v844_v55 }
   0xf   :  { %177 = vmatpush.bf16.msra.mxu1 %v879_v40  ;;  %v1011_v62 = vor.u32 %v1275_v59, %v1010_v58  ;;  %v1012_v63 = vld [vmem:[%s1915_s0 + $0x130] sm:$0x30]  ;;  %v1018_v0 = vld [vmem:[%s1915_s0 + $0x128] sm:$0xf]  ;;  %v1276_v1 = vld [vmem:[%s1915_s0 + $0x134] sm:$0x30] }
  0x10   :  { %191 = vmatpush.bf16.msra.mxu2 %v883_v44  ;;  %v1240_v3 = vld [vmem:[%s1915_s0 + $0x14] sm:$0xf0]  ;;  %v1015_v4 = vor.u32 %v1273_v60, %v1012_v63  ;;  %v1019_v6 = vor.u32 %v1276_v1, %v1018_v0  ;;  %v1274_v7 = vld [vmem:[%s1915_s0 + $0x12c] sm:$0xf]  ;;  %v1020_v8 = vld [vmem:[%s1915_s0 + $0x138] sm:$0x30] }
  0x11   :  { %205 = vmatpush.bf16.msra.mxu3 %v887_v48  ;;  %v1238_v10 = vld [vmem:[%s1915_s0 + $0xc] sm:$0xf]  ;;  %v852_v11 = vld [vmem:[%s1915_s0 + $0x18] sm:$0xf0]  ;;  %v1023_v12 = vor.u32 %v1274_v7, %v1020_v8  ;;  %v332_v14 = vand.u32 %v1011_v62, %v1348_v5  ;;  %v851_v15 = vor.u32 %v1240_v3, %v850_v57  ;;  %v1497_v17 = vld [vmem:[%s1916_s1] sm:$0xff] }
  0x12   :  { %164 = vmatpush.bf16.msra.mxu0 %v859_v52  ;;  %v335_v16 = vand.u32 %v1015_v4, %v1348_v5  ;;  %v855_v18 = vor.u32 %v1238_v10, %v852_v11  ;;  %v338_v19 = vand.u32 %v1019_v6, %v1348_v5  ;;  %v994_v20 = vld [vmem:[%s1915_s0 + $0x100] sm:$0xf]  ;;  %v1271_v21 = vld [vmem:[%s1915_s0 + $0x10c] sm:$0xf0]  ;;  %v1269_v22 = vld [vmem:[%s1915_s0 + $0x104] sm:$0xf] }
  0x13   :  { %178 = vmatpush.bf16.msra.mxu1 %v863_v56  ;;  %v341_v23 = vand.u32 %v1023_v12, %v1348_v5  ;;  %v996_v24 = vld [vmem:[%s1915_s0 + $0x110] sm:$0xf0]  ;;  %v1002_v25 = vld [vmem:[%s1915_s0 + $0x108] sm:$0xf]  ;;  %v1272_v26 = vld [vmem:[%s1915_s0 + $0x114] sm:$0xf0]  ;;  %v995_v29 = vor.u32 %v1271_v21, %v994_v20 }
  0x14   :  { %192 = vmatpush.bf16.msra.mxu2 %v867_v61  ;;  %v1270_v27 = vld [vmem:[%s1915_s0 + $0x10c] sm:$0xf]  ;;  %v1004_v28 = vld [vmem:[%s1915_s0 + $0x118] sm:$0xf0]  ;;  %v999_v30 = vor.u32 %v1269_v22, %v996_v24  ;;  %v1003_v31 = vor.u32 %v1272_v26, %v1002_v25  ;;  %v978_v32 = vld [vmem:[%s1915_s0 + $0xe0] sm:$0xf] }
  0x15   :  { %206 = vmatpush.bf16.msra.mxu3 %v871_v2  ;;  %v1267_v33 = vld [vmem:[%s1915_s0 + $0xec] sm:$0xf0]  ;;  %v1265_v34 = vld [vmem:[%s1915_s0 + $0xe4] sm:$0xf]  ;;  %v1007_v35 = vor.u32 %v1270_v27, %v1004_v28  ;;  %v980_v36 = vld [vmem:[%s1915_s0 + $0xf0] sm:$0xf0] }
  0x16   :  { %165 = vmatpush.bf16.msra.mxu0 %v843_v9  ;;  %v986_v37 = vld [vmem:[%s1915_s0 + $0xe8] sm:$0xf]  ;;  %v1268_v38 = vld [vmem:[%s1915_s0 + $0xf4] sm:$0xf0]  ;;  %v1266_v39 = vld [vmem:[%s1915_s0 + $0xec] sm:$0xf]  ;;  %v979_v41 = vor.u32 %v1267_v33, %v978_v32  ;;  %v983_v44 = vor.u32 %v1265_v34, %v980_v36 }
  0x17   :  { %179 = vmatpush.bf16.msra.mxu1 %v847_v13  ;;  %v988_v40 = vld [vmem:[%s1915_s0 + $0xf8] sm:$0xf0]  ;;  %v962_v42 = vld [vmem:[%s1915_s0 + $0xc0] sm:$0xf]  ;;  %v1263_v43 = vld [vmem:[%s1915_s0 + $0xcc] sm:$0xf0]  ;;  %v987_v45 = vor.u32 %v1268_v38, %v986_v37 }
  0x18   :  { %193 = vmatpush.bf16.msra.mxu2 %v851_v15  ;;  %v1261_v46 = vld [vmem:[%s1915_s0 + $0xc4] sm:$0xf]  ;;  %v964_v47 = vld [vmem:[%s1915_s0 + $0xd0] sm:$0xf0]  ;;  %v970_v48 = vld [vmem:[%s1915_s0 + $0xc8] sm:$0xf]  ;;  %v991_v49 = vor.u32 %v1266_v39, %v988_v40  ;;  %v963_v58 = vor.u32 %v1263_v43, %v962_v42 }
  0x19   :  { %207 = vmatpush.bf16.msra.mxu3 %v855_v18  ;;  %920 = vmatmul.msk.bf16.vlgmr.msra.gmra.mxu0 %vm138_vm2, %v1497_v17  ;;  %v1264_v50 = vld [vmem:[%s1915_s0 + $0xd4] sm:$0xf0]  ;;  %v1262_v51 = vld [vmem:[%s1915_s0 + $0xcc] sm:$0xf]  ;;  %v972_v52 = vld [vmem:[%s1915_s0 + $0xd8] sm:$0xf0]  ;;  %v967_v62 = vor.u32 %v1261_v46, %v964_v47 }
  0x1a   :  { %346 = vmatpush.bf16.msrb.mxu0 %v332_v14  ;;  %921 = vmatmul.msk.bf16.vlgmr.msra.gmra.mxu1 %vm138_vm2, %v1497_v17  ;;  %v946_v53 = vld [vmem:[%s1915_s0 + $0xa0] sm:$0xf]  ;;  %v1259_v54 = vld [vmem:[%s1915_s0 + $0xac] sm:$0xf0]  ;;  %v1293_v57 = vld [vmem:[%s1915_s0 + $0x1c4] sm:$0xf]  ;;  %v971_v63 = vor.u32 %v1264_v50, %v970_v48  ;;  %v975_v3 = vor.u32 %v1262_v51, %v972_v52 }
  0x1b   :  { %360 = vmatpush.bf16.msrb.mxu1 %v335_v16  ;;  %922 = vmatmul.msk.bf16.vlgmr.msra.gmra.mxu2 %vm138_vm2, %v1497_v17  ;;  %v1114_v55 = vld [vmem:[%s1915_s0 + $0x1c0] sm:$0xf]  ;;  %v1295_v56 = vld [vmem:[%s1915_s0 + $0x1cc] sm:$0x30]  ;;  %v1116_v59 = vld [vmem:[%s1915_s0 + $0x1d0] sm:$0x30]  ;;  %v947_v13 = vor.u32 %v1259_v54, %v946_v53 }
  0x1c   :  { %374 = vmatpush.bf16.msrb.mxu2 %v338_v19  ;;  %923 = vmatmul.msk.bf16.vlgmr.msra.gmra.mxu3 %vm138_vm2, %v1497_v17  ;;  %v1122_v60 = vld [vmem:[%s1915_s0 + $0x1c8] sm:$0xf]  ;;  %v1296_v61 = vld [vmem:[%s1915_s0 + $0x1d4] sm:$0x30]  ;;  %v1257_v0 = vld [vmem:[%s1915_s0 + $0xa4] sm:$0xf]  ;;  %v1115_v8 = vor.u32 %v1295_v56, %v1114_v55  ;;  %v1119_v11 = vor.u32 %v1293_v57, %v1116_v59 }
  0x1d   :  { %388 = vmatpush.bf16.msrb.mxu3 %v341_v23  ;;  %v1294_v1 = vld [vmem:[%s1915_s0 + $0x1cc] sm:$0xf]  ;;  %v1124_v2 = vld [vmem:[%s1915_s0 + $0x1d8] sm:$0x30]  ;;  %v948_v4 = vld [vmem:[%s1915_s0 + $0xb0] sm:$0xf0]  ;;  %v1123_v12 = vor.u32 %v1296_v61, %v1122_v60 }
  0x1e   :  { %347 = vmatpush.bf16.msrb.mxu0 %v995_v29  ;;  %v954_v6 = vld [vmem:[%s1915_s0 + $0xa8] sm:$0xf]  ;;  %v1260_v7 = vld [vmem:[%s1915_s0 + $0xb4] sm:$0xf0]  ;;  %v1258_v9 = vld [vmem:[%s1915_s0 + $0xac] sm:$0xf]  ;;  %v1127_v14 = vor.u32 %v1294_v1, %v1124_v2  ;;  %v951_v15 = vor.u32 %v1257_v0, %v948_v4  ;;  %v525_v19 = vand.u32 %v1115_v8, %v1348_v5  ;;  %v528_v20 = vand.u32 %v1119_v11, %v1348_v5 }
  0x1f   :  { %361 = vmatpush.bf16.msrb.mxu1 %v999_v30  ;;  %v956_v10 = vld [vmem:[%s1915_s0 + $0xb8] sm:$0xf0]  ;;  %v955_v16 = vor.u32 %v1260_v7, %v954_v6  ;;  %v531_v21 = vand.u32 %v1123_v12, %v1348_v5  ;;  %v1098_v22 = vld [vmem:[%s1915_s0 + $0x1a0] sm:$0xf]  ;;  %v1291_v23 = vld [vmem:[%s1915_s0 + $0x1ac] sm:$0xf0] }
  0x20   :  { %375 = vmatpush.bf16.msrb.mxu2 %v1003_v31  ;;  %v959_v18 = vor.u32 %v1258_v9, %v956_v10  ;;  %v1289_v24 = vld [vmem:[%s1915_s0 + $0x1a4] sm:$0xf]  ;;  %v534_v25 = vand.u32 %v1127_v14, %v1348_v5  ;;  %v1100_v26 = vld [vmem:[%s1915_s0 + $0x1b0] sm:$0xf0]  ;;  %v1106_v27 = vld [vmem:[%s1915_s0 + $0x1a8] sm:$0xf]  ;;  %v1099_v31 = vor.u32 %v1291_v23, %v1098_v22 }
  0x21   :  { %389 = vmatpush.bf16.msrb.mxu3 %v1007_v35  ;;  %v1292_v28 = vld [vmem:[%s1915_s0 + $0x1b4] sm:$0xf0]  ;;  %v1290_v29 = vld [vmem:[%s1915_s0 + $0x1ac] sm:$0xf]  ;;  %v1108_v30 = vld [vmem:[%s1915_s0 + $0x1b8] sm:$0xf0]  ;;  %v1103_v32 = vor.u32 %v1289_v24, %v1100_v26 }
  0x22   :  { %348 = vmatpush.bf16.msrb.mxu0 %v979_v41  ;;  %v1107_v33 = vor.u32 %v1292_v28, %v1106_v27  ;;  %v1082_v34 = vld [vmem:[%s1915_s0 + $0x180] sm:$0xf]  ;;  %v1287_v35 = vld [vmem:[%s1915_s0 + $0x18c] sm:$0xf0]  ;;  %v1285_v36 = vld [vmem:[%s1915_s0 + $0x184] sm:$0xf]  ;;  %v1111_v37 = vor.u32 %v1290_v29, %v1108_v30 }
  0x23   :  { %362 = vmatpush.bf16.msrb.mxu1 %v983_v44  ;;  %v1084_v38 = vld [vmem:[%s1915_s0 + $0x190] sm:$0xf0]  ;;  %v1090_v39 = vld [vmem:[%s1915_s0 + $0x188] sm:$0xf]  ;;  %v1288_v40 = vld [vmem:[%s1915_s0 + $0x194] sm:$0xf0]  ;;  %v1083_v43 = vor.u32 %v1287_v35, %v1082_v34 }
  0x24   :  { %376 = vmatpush.bf16.msrb.mxu2 %v987_v45  ;;  %v1286_v41 = vld [vmem:[%s1915_s0 + $0x18c] sm:$0xf]  ;;  %v1092_v42 = vld [vmem:[%s1915_s0 + $0x198] sm:$0xf0]  ;;  %v1066_v44 = vld [vmem:[%s1915_s0 + $0x160] sm:$0xf]  ;;  %v1087_v46 = vor.u32 %v1285_v36, %v1084_v38  ;;  %v1091_v47 = vor.u32 %v1288_v40, %v1090_v39 }
  0x25   :  { %390 = vmatpush.bf16.msrb.mxu3 %v991_v49  ;;  %v1283_v45 = vld [vmem:[%s1915_s0 + $0x16c] sm:$0xf0]  ;;  %v1281_v48 = vld [vmem:[%s1915_s0 + $0x164] sm:$0xf]  ;;  %v1068_v49 = vld [vmem:[%s1915_s0 + $0x170] sm:$0xf0]  ;;  %v1095_v51 = vor.u32 %v1286_v41, %v1092_v42 }
  0x26   :  { %349 = vmatpush.bf16.msrb.mxu0 %v963_v58  ;;  %v1074_v50 = vld [vmem:[%s1915_s0 + $0x168] sm:$0xf]  ;;  %v1284_v52 = vld [vmem:[%s1915_s0 + $0x174] sm:$0xf0]  ;;  %v1282_v53 = vld [vmem:[%s1915_s0 + $0x16c] sm:$0xf]  ;;  %v1067_v60 = vor.u32 %v1283_v45, %v1066_v44  ;;  %v1071_v0 = vor.u32 %v1281_v48, %v1068_v49 }
  0x27   :  { %363 = vmatpush.bf16.msrb.mxu1 %v967_v62  ;;  %v1076_v54 = vld [vmem:[%s1915_s0 + $0x178] sm:$0xf0]  ;;  %v1050_v55 = vld [vmem:[%s1915_s0 + $0x140] sm:$0xf]  ;;  %v1279_v56 = vld [vmem:[%s1915_s0 + $0x14c] sm:$0xf0]  ;;  %v1075_v1 = vor.u32 %v1284_v52, %v1074_v50 }
  0x28   :  { %377 = vmatpush.bf16.msrb.mxu2 %v971_v63  ;;  %v1218_v57 = vld [vmem:[%s1915_s0 + $0x260] sm:$0xf]  ;;  %v1315_v58 = vld [vmem:[%s1915_s0 + $0x26c] sm:$0x30]  ;;  %v1313_v59 = vld [vmem:[%s1915_s0 + $0x264] sm:$0xf]  ;;  %v1079_v6 = vor.u32 %v1282_v53, %v1076_v54 }
  0x29   :  { %391 = vmatpush.bf16.msrb.mxu3 %v975_v3  ;;  %v1220_v61 = vld [vmem:[%s1915_s0 + $0x270] sm:$0x30]  ;;  %v1226_v62 = vld [vmem:[%s1915_s0 + $0x268] sm:$0xf]  ;;  %v1316_v63 = vld [vmem:[%s1915_s0 + $0x274] sm:$0x30]  ;;  %v1219_v10 = vor.u32 %v1315_v58, %v1218_v57 }
  0x2a   :  { %350 = vmatpush.bf16.msrb.mxu0 %v947_v13  ;;  %v1277_v2 = vld [vmem:[%s1915_s0 + $0x144] sm:$0xf]  ;;  %v1314_v3 = vld [vmem:[%s1915_s0 + $0x26c] sm:$0xf]  ;;  %v1228_v4 = vld [vmem:[%s1915_s0 + $0x278] sm:$0x30]  ;;  %v1223_v13 = vor.u32 %v1313_v59, %v1220_v61  ;;  %v1227_v14 = vor.u32 %v1316_v63, %v1226_v62 }
  0x2b   :  { %364 = vmatpush.bf16.msrb.mxu1 %v951_v15  ;;  %v1052_v7 = vld [vmem:[%s1915_s0 + $0x150] sm:$0xf0]  ;;  %v1058_v8 = vld [vmem:[%s1915_s0 + $0x148] sm:$0xf]  ;;  %v1280_v9 = vld [vmem:[%s1915_s0 + $0x154] sm:$0xf0]  ;;  %v1051_v15 = vor.u32 %v1279_v56, %v1050_v55  ;;  %v710_v22 = vand.u32 %v1219_v10, %v1348_v5 }
  0x2c   :  { %378 = vmatpush.bf16.msrb.mxu2 %v955_v16  ;;  %v1278_v11 = vld [vmem:[%s1915_s0 + $0x14c] sm:$0xf]  ;;  %v1060_v12 = vld [vmem:[%s1915_s0 + $0x158] sm:$0xf0]  ;;  %v1231_v16 = vor.u32 %v1314_v3, %v1228_v4  ;;  %v1321_v23 = vmov 0   ;;  %v713_v24 = vand.u32 %v1223_v13, %v1348_v5  ;;  %vm1896_vm5 = vmor %vm827_vm4, %vm826_vm3 }
  0x2d   :  { %392 = vmatpush.bf16.msrb.mxu3 %v959_v18  ;;  %1024 = vmatmul.msk.bf16.vlgmr.msrb.gmra.mxu0 %vm138_vm2, %v1497_v17  ;;  %v1055_v18 = vor.u32 %v1277_v2, %v1052_v7  ;;  %v1202_v26 = vld [vmem:[%s1915_s0 + $0x240] sm:$0xf]  ;;  %v1311_v27 = vld [vmem:[%s1915_s0 + $0x24c] sm:$0xf0]  ;;  %v1309_v28 = vld [vmem:[%s1915_s0 + $0x244] sm:$0xf] }
  0x2e   :  { %539 = vmatpush.bf16.msra.mxu0 %v525_v19  ;;  %1025 = vmatmul.msk.bf16.vlgmr.msrb.gmra.mxu1 %vm138_vm2, %v1497_v17  ;;  %v1059_v19 = vor.u32 %v1280_v9, %v1058_v8  ;;  %v719_v29 = vand.u32 %v1231_v16, %v1348_v5  ;;  %v1204_v30 = vld [vmem:[%s1915_s0 + $0x250] sm:$0xf0]  ;;  %v1203_v34 = vor.u32 %v1311_v27, %v1202_v26  ;;  %v1307_v38 = vld [vmem:[%s1915_s0 + $0x22c] sm:$0xf0]  ;;  %v1305_v39 = vld [vmem:[%s1915_s0 + $0x224] sm:$0xf] }
  0x2f   :  { %553 = vmatpush.bf16.msra.mxu1 %v528_v20  ;;  %1026 = vmatmul.msk.bf16.vlgmr.msrb.gmra.mxu2 %vm138_vm2, %v1497_v17  ;;  %v793_v20 = vld [vmem:[%s1917_s2] sm:$0xff]  ;;  %v1207_v35 = vor.u32 %v1309_v28, %v1204_v30  ;;  %v1188_v41 = vld [vmem:[%s1915_s0 + $0x230] sm:$0xf0]  ;;  %v1194_v42 = vld [vmem:[%s1915_s0 + $0x228] sm:$0xf] }
  0x30   :  { %567 = vmatpush.bf16.msra.mxu2 %v531_v21  ;;  %1027 = vmatmul.msk.bf16.vlgmr.msrb.gmra.mxu3 %vm138_vm2, %v1497_v17  ;;  %v1063_v21 = vor.u32 %v1278_v11, %v1060_v12  ;;  %v1306_v44 = vld [vmem:[%s1915_s0 + $0x22c] sm:$0xf]  ;;  %v1196_v45 = vld [vmem:[%s1915_s0 + $0x238] sm:$0xf0]  ;;  %v1191_v48 = vor.u32 %v1305_v39, %v1188_v41  ;;  %v1170_v50 = vld [vmem:[%s1915_s0 + $0x200] sm:$0xf] }
  0x31   :  { %581 = vmatpush.bf16.msra.mxu3 %v534_v25  ;;  %1319 = vset.pattern.permute.xlu0 %v1321_v23  ;;  %v716_v25 = vand.u32 %v1227_v14, %v1348_v5  ;;  %v1212_v5 = vld [vmem:[%s1915_s0 + $0x258] sm:$0xf0]  ;;  %v1301_v52 = vld [vmem:[%s1915_s0 + $0x204] sm:$0xf]  ;;  %v1199_v53 = vor.u32 %v1306_v44, %v1196_v45  ;;  %v1172_v54 = vld [vmem:[%s1915_s0 + $0x210] sm:$0xf0] }
  0x32   :  { %540 = vmatpush.bf16.msra.mxu0 %v1099_v31  ;;  %797 = vperm.xlu0 %1319, %v793_v20   ;;  %v1210_v31 = vld [vmem:[%s1915_s0 + $0x248] sm:$0xf]  ;;  %v1304_v56 = vld [vmem:[%s1915_s0 + $0x214] sm:$0xf0]  ;;  %v1302_v57 = vld [vmem:[%s1915_s0 + $0x20c] sm:$0xf] }
  0x33   :  { %554 = vmatpush.bf16.msra.mxu1 %v1103_v32  ;;  %v1312_v32 = vld [vmem:[%s1915_s0 + $0x254] sm:$0xf0]  ;;  %v1178_v55 = vld [vmem:[%s1915_s0 + $0x208] sm:$0xf]  ;;  %v1180_v58 = vld [vmem:[%s1915_s0 + $0x218] sm:$0xf0] }
  0x34   :  { %568 = vmatpush.bf16.msra.mxu2 %v1107_v33  ;;  %v1310_v33 = vld [vmem:[%s1915_s0 + $0x24c] sm:$0xf]  ;;  %v1211_v36 = vor.u32 %v1312_v32, %v1210_v31  ;;  %v1179_v61 = vor.u32 %v1304_v56, %v1178_v55  ;;  %v1154_v62 = vld [vmem:[%s1915_s0 + $0x1e0] sm:$0xf]  ;;  %v1299_v63 = vld [vmem:[%s1915_s0 + $0x1ec] sm:$0xf0] }
  0x35   :  { %582 = vmatpush.bf16.msra.mxu3 %v1111_v37  ;;  %v1186_v37 = vld [vmem:[%s1915_s0 + $0x220] sm:$0xf]  ;;  %v1215_v40 = vor.u32 %v1310_v33, %v1212_v5  ;;  %v1156_v2 = vld [vmem:[%s1915_s0 + $0x1f0] sm:$0xf0]  ;;  %v1162_v3 = vld [vmem:[%s1915_s0 + $0x1e8] sm:$0xf]  ;;  %v1155_v8 = vor.u32 %v1299_v63, %v1154_v62 }
  0x36   :  { %541 = vmatpush.bf16.msra.mxu0 %v1083_v43  ;;  %v1308_v43 = vld [vmem:[%s1915_s0 + $0x234] sm:$0xf0]  ;;  %v1164_v7 = vld [vmem:[%s1915_s0 + $0x1f8] sm:$0xf0] }
  0x37   :  { %555 = vmatpush.bf16.msra.mxu1 %v1087_v46  ;;  %v794_v46 = vld [vmem:[%s1917_s2 + $0x8] sm:$0xff]  ;;  %v1195_v49 = vor.u32 %v1308_v43, %v1194_v42  ;;  %v1300_v4 = vld [vmem:[%s1915_s0 + $0x1f4] sm:$0xf0] }
  0x38   :  { %569 = vmatpush.bf16.msra.mxu2 %v1091_v47  ;;  %v1187_v47 = vor.u32 %v1307_v38, %v1186_v37  ;;  %v1163_v10 = vor.u32 %v1300_v4, %v1162_v3 }
  0x39   :  { %583 = vmatpush.bf16.msra.mxu3 %v1095_v51  ;;  %v1303_v51 = vld [vmem:[%s1915_s0 + $0x20c] sm:$0xf0] }
  0x3a   :  { %542 = vmatpush.bf16.msra.mxu0 %v1067_v60  ;;  %802 = vperm.xlu0 %1319, %v794_v46   ;;  %v1171_v59 = vor.u32 %v1303_v51, %v1170_v50  ;;  %v1175_v60 = vor.u32 %v1301_v52, %v1172_v54 }
  0x3b   :  { %556 = vmatpush.bf16.msra.mxu1 %v1071_v0  ;;  %v1297_v0 = vld [vmem:[%s1915_s0 + $0x1e4] sm:$0xf] }
  0x3c   :  { %570 = vmatpush.bf16.msra.mxu2 %v1075_v1  ;;  %v1183_v1 = vor.u32 %v1302_v57, %v1180_v58  ;;  %v1159_v9 = vor.u32 %v1297_v0, %v1156_v2 }
  0x3d   :  { %584 = vmatpush.bf16.msra.mxu3 %v1079_v6  ;;  %v1298_v6 = vld [vmem:[%s1915_s0 + $0x1ec] sm:$0xf] }
  0x3e   :  { %543 = vmatpush.bf16.msra.mxu0 %v1051_v15  ;;  %v1167_v11 = vor.u32 %v1298_v6, %v1164_v7 }
  0x3f   :  { %557 = vmatpush.bf16.msra.mxu1 %v1055_v18 }
  0x40   :  { %571 = vmatpush.bf16.msra.mxu2 %v1059_v19 }
  0x41   :  { %585 = vmatpush.bf16.msra.mxu3 %v1063_v21  ;;  %1128 = vmatmul.msk.bf16.vlgmr.msra.gmra.mxu0 %vm138_vm2, %v1497_v17 }
  0x42   :  { %724 = vmatpush.bf16.msrb.mxu0 %v710_v22  ;;  %1129 = vmatmul.msk.bf16.vlgmr.msra.gmra.mxu1 %vm138_vm2, %v1497_v17 }
  0x43   :  { %738 = vmatpush.bf16.msrb.mxu1 %v713_v24  ;;  %1130 = vmatmul.msk.bf16.vlgmr.msra.gmra.mxu2 %vm138_vm2, %v1497_v17 }
  0x44   :  { %752 = vmatpush.bf16.msrb.mxu2 %v716_v25  ;;  %1131 = vmatmul.msk.bf16.vlgmr.msra.gmra.mxu3 %vm138_vm2, %v1497_v17 }
  0x45   :  { %766 = vmatpush.bf16.msrb.mxu3 %v719_v29 }
  0x46   :  { %725 = vmatpush.bf16.msrb.mxu0 %v1203_v34 }
  0x47   :  { %739 = vmatpush.bf16.msrb.mxu1 %v1207_v35 }
  0x48   :  { %753 = vmatpush.bf16.msrb.mxu2 %v1211_v36 }
  0x49   :  { %767 = vmatpush.bf16.msrb.mxu3 %v1215_v40 }
  0x4a   :  { %726 = vmatpush.bf16.msrb.mxu0 %v1187_v47 }
  0x4b   :  { %740 = vmatpush.bf16.msrb.mxu1 %v1191_v48 }
  0x4c   :  { %754 = vmatpush.bf16.msrb.mxu2 %v1195_v49 }
  0x4d   :  { %768 = vmatpush.bf16.msrb.mxu3 %v1199_v53 }
  0x4e   :  { %727 = vmatpush.bf16.msrb.mxu0 %v1171_v59 }
  0x4f   :  { %741 = vmatpush.bf16.msrb.mxu1 %v1175_v60 }
  0x50   :  { %755 = vmatpush.bf16.msrb.mxu2 %v1179_v61 }
  0x51   :  { %769 = vmatpush.bf16.msrb.mxu3 %v1183_v1 }
  0x52   :  { %728 = vmatpush.bf16.msrb.mxu0 %v1155_v8 }
  0x53   :  { %742 = vmatpush.bf16.msrb.mxu1 %v1159_v9 }
  0x54   :  { %756 = vmatpush.bf16.msrb.mxu2 %v1163_v10 }
  0x55   :  { %770 = vmatpush.bf16.msrb.mxu3 %v1167_v11  ;;  %1232 = vmatmul.msk.bf16.vlgmr.msrb.gmra.mxu0 %vm138_vm2, %v1497_v17 }
  0x56   :  { %1233 = vmatmul.msk.bf16.vlgmr.msrb.gmra.mxu1 %vm138_vm2, %v1497_v17 }
  0x57   :  { %1234 = vmatmul.msk.bf16.vlgmr.msrb.gmra.mxu2 %vm138_vm2, %v1497_v17 }
  0x58   :  { %1235 = vmatmul.msk.bf16.vlgmr.msrb.gmra.mxu3 %vm138_vm2, %v1497_v17 }
  0x96   :  { %v167_v12 = vpop.f32.mrf.mxu0 }
  0x97   :  { %v181_v13 = vpop.f32.mrf.mxu1 }
  0x9e   :  { %v195_v14 = vpop.f32.mrf.mxu2  ;;  %v169_v16 = vpop.f32.mrf.mxu0 }
  0x9f   :  { %v209_v15 = vpop.f32.mrf.mxu3  ;;  %v183_v18 = vpop.f32.mrf.mxu1 }
  0xa4   :  { %v798_v41 = vpop.permute.xlu0 %797 }
  0xa6   :  { %v1883_v19 = vpop.f32.mrf.mxu2 }
  0xa7   :  { %v1885_v20 = vpop.f32.mrf.mxu3 }
  0xaa   :  { %v352_v21 = vpop.f32.mrf.mxu0 }
  0xab   :  { %v366_v22 = vpop.f32.mrf.mxu1  ;;  %v399_v36 = vmax.f32 %v167_v12, %v352_v21 }
  0xac   :  { %v400_v39 = vmax.f32 %v181_v13, %v366_v22  ;;  %v803_v2 = vpop.permute.xlu0 %802 }
  0xb2   :  { %v380_v23 = vpop.f32.mrf.mxu2  ;;  %v354_v25 = vpop.f32.mrf.mxu0 }
  0xb3   :  { %v394_v24 = vpop.f32.mrf.mxu3  ;;  %v368_v26 = vpop.f32.mrf.mxu1  ;;  %v401_v48 = vmax.f32 %v195_v14, %v380_v23  ;;  %v403_v54 = vmax.f32 %v169_v16, %v354_v25 }
  0xb4   :  { %v402_v53 = vmax.f32 %v209_v15, %v394_v24  ;;  %v404_v58 = vmax.f32 %v183_v18, %v368_v26 }
  0xba   :  { %v1887_v27 = vpop.f32.mrf.mxu2 }
  0xbb   :  { %v1889_v28 = vpop.f32.mrf.mxu3  ;;  %v405_v11 = vmax.f32 %v1883_v19, %v1887_v27 }
  0xbc   :  { %v406_v16 = vmax.f32 %v1885_v20, %v1889_v28 }
  0xbe   :  { %v545_v17 = vpop.f32.mrf.mxu0 }
  0xbf   :  { %v559_v29 = vpop.f32.mrf.mxu1 }
  0xc6   :  { %v573_v30 = vpop.f32.mrf.mxu2  ;;  %v547_v32 = vpop.f32.mrf.mxu0 }
  0xc7   :  { %v587_v31 = vpop.f32.mrf.mxu3  ;;  %v561_v33 = vpop.f32.mrf.mxu1 }
  0xce   :  { %v575_v5 = vpop.f32.mrf.mxu2 }
  0xcf   :  { %v589_v34 = vpop.f32.mrf.mxu3 }
  0xd2   :  { %v730_v35 = vpop.f32.mrf.mxu0 }
  0xd3   :  { %v777_v37 = vmax.f32 %v545_v17, %v730_v35  ;;  %v744_v38 = vpop.f32.mrf.mxu1 }
  0xd4   :  { %v778_v40 = vmax.f32 %v559_v29, %v744_v38 }
  0xd5   :  { %v785_v42 = vmax.f32 %v399_v36, %v777_v37 }
  0xd6   :  { %v786_v43 = vmax.f32 %v400_v39, %v778_v40 }
  0xd7   :  { %v805_v44 = vadd.f32 %v798_v41, %v785_v42 }
  0xd8   :  { %v806_v45 = vadd.f32 %v798_v41, %v786_v43 }
  0xd9   :  { %v813_v46 = vmax.f32 %v805_v44, 0.0 }
  0xda   :  { %v758_v47 = vpop.f32.mrf.mxu2  ;;  %v814_v49 = vmax.f32 %v806_v45, 0.0  ;;  %v732_v52 = vpop.f32.mrf.mxu0 }
  0xdb   :  { %v779_v50 = vmax.f32 %v573_v30, %v758_v47  ;;  %v772_v51 = vpop.f32.mrf.mxu3  ;;  %v781_v56 = vmax.f32 %v547_v32, %v732_v52  ;;  %v746_v57 = vpop.f32.mrf.mxu1 }
  0xdc   :  { %v780_v55 = vmax.f32 %v587_v31, %v772_v51  ;;  %v821_v59 = vpack.c.bf16 %v814_v49, %v813_v46  ;;  %v782_v61 = vmax.f32 %v561_v33, %v746_v57 }
  0xdd   :  { %v787_v60 = vmax.f32 %v401_v48, %v779_v50  ;;  %v789_v63 = vmax.f32 %v403_v54, %v781_v56 }
  0xde   :  { %v788_v62 = vmax.f32 %v402_v53, %v780_v55  ;;  %825 = vst [vmem:[%s1918_s3] sm:$0xff] %v821_v59  ;;  %v790_v1 = vmax.f32 %v404_v58, %v782_v61 }
  0xdf   :  { %v807_v0 = vadd.f32 %v798_v41, %v787_v60  ;;  %v809_v4 = vadd.f32 %v803_v2, %v789_v63 }
  0xe0   :  { %v808_v3 = vadd.f32 %v798_v41, %v788_v62  ;;  %v810_v7 = vadd.f32 %v803_v2, %v790_v1 }
  0xe1   :  { %v815_v6 = vmax.f32 %v807_v0, 0.0  ;;  %v817_v9 = vmax.f32 %v809_v4, 0.0 }
  0xe2   :  { %v816_v8 = vmax.f32 %v808_v3, 0.0  ;;  %v760_v10 = vpop.f32.mrf.mxu2  ;;  %v818_v13 = vmax.f32 %v810_v7, 0.0 }
  0xe3   :  { %v783_v14 = vmax.f32 %v575_v5, %v760_v10  ;;  %v774_v15 = vpop.f32.mrf.mxu3 }
  0xe4   :  { %v822_v18 = vpack.c.bf16 %v816_v8, %v815_v6  ;;  %v784_v21 = vmax.f32 %v589_v34, %v774_v15  ;;  %v823_v22 = vpack.c.bf16 %v818_v13, %v817_v9 }
  0xe5   :  { %v791_v23 = vmax.f32 %v405_v11, %v783_v14 }
  0xe6   :  { %829 = vst.msk [vmem:[%s1918_s3 + $0x8] sm:$0xff] %vm1896_vm5, %v822_v18  ;;  %v792_v19 = vmax.f32 %v406_v16, %v784_v21 }
  0xe7   :  { %830 = vst [vmem:[%s1918_s3 + $0x10] sm:$0xff] %v823_v22  ;;  %v811_v24 = vadd.f32 %v803_v2, %v791_v23 }
  0xe8   :  { %v812_v25 = vadd.f32 %v803_v2, %v792_v19 }
  0xe9   :  { %v819_v26 = vmax.f32 %v811_v24, 0.0 }
  0xea   :  { %v820_v27 = vmax.f32 %v812_v25, 0.0 }
  0xec   :  { %v824_v20 = vpack.c.bf16 %v820_v27, %v819_v26 }
  0xee   :  { %831 = vst.msk [vmem:[%s1918_s3 + $0x18] sm:$0xff] %vm1896_vm5, %v824_v20 }

// kernel: net_forward.4
= control target key start
LH: loop header
LB: loop body
LE: loop exit
PB: predicated region body
PF: predicated region fallthrough
CT: control target
= control target key end

     0   :  { %vm261_vm0 = vcmask 130048   ;;  %vm1223_vm1 = vcmask 404480   ;;  %s2424_s0 = inlined_call_operand.vmem [shape: bf16[4,400,50], index: 0, kind: input, shape index: {}]   ;;  %s2425_s1 = inlined_call_operand.vmem [shape: bf16[32,400], index: 1, kind: input, shape index: {}]   ;;  %s2426_s2 = inlined_call_operand.vmem [shape: f32[32,1], index: 2, kind: input, shape index: {}]   ;;  %s2427_s3 = inlined_call_operand.vmem [shape: bf16[32,50], index: 3, kind: output, shape index: {}]  }
   0x1   :  { %v1837_v0 = vld [vmem:[%s2424_s0 + $0x38] sm:$0xff]  ;;  %v1854_v3 = vld [vmem:[%s2424_s0 + $0xc0] sm:$0xff]  ;;  %v1823_v4 = vld [vmem:[%s2425_s1 + $0xc] sm:$0xf] }
   0x2   :  { %v1845_v1 = vld [vmem:[%s2424_s0 + $0x78] sm:$0xff]  ;;  %268 = vmatpush.bf16.msra.mxu0 %v1837_v0  ;;  %v1836_v7 = vld [vmem:[%s2424_s0 + $0x30] sm:$0xff]  ;;  %332 = vmatpush.bf16.msra.mxu3 %v1854_v3  ;;  %v1862_v10 = vld [vmem:[%s2424_s0 + $0x100] sm:$0xff] }
   0x3   :  { %v1853_v2 = vld [vmem:[%s2424_s0 + $0xb8] sm:$0xff]  ;;  %287 = vmatpush.bf16.msra.mxu1 %v1845_v1  ;;  %v1844_v8 = vld [vmem:[%s2424_s0 + $0x70] sm:$0xff]  ;;  %v1835_v12 = vld [vmem:[%s2424_s0 + $0x28] sm:$0xff] }
   0x4   :  { %v1244_v5 = vld [vmem:[%s2425_s1 + $0x18] sm:$0xf0]  ;;  %306 = vmatpush.bf16.msra.mxu2 %v1853_v2  ;;  %v1852_v9 = vld [vmem:[%s2424_s0 + $0xb0] sm:$0xff]  ;;  %v1843_v13 = vld [vmem:[%s2424_s0 + $0x68] sm:$0xff] }
   0x5   :  { %v1980_v6 = vor.u32 %v1823_v4, %v1244_v5  ;;  %v1861_v11 = vld [vmem:[%s2424_s0 + $0xf8] sm:$0xff]  ;;  %v1851_v14 = vld [vmem:[%s2424_s0 + $0xa8] sm:$0xff]  ;;  %v1860_v15 = vld [vmem:[%s2424_s0 + $0xf0] sm:$0xff] }
   0x6   :  { %545 = vmatpush.bf16.msrb.mxu3 %v1862_v10  ;;  %269 = vmatpush.bf16.msra.mxu0 %v1836_v7  ;;  %v1834_v16 = vld [vmem:[%s2424_s0 + $0x20] sm:$0xff]  ;;  %v1859_v19 = vld [vmem:[%s2424_s0 + $0xe8] sm:$0xff]  ;;  %v1833_v20 = vld [vmem:[%s2424_s0 + $0x18] sm:$0xff] }
   0x7   :  { %1364 = vmatmul.msk.bf16.vlgmr.msra.gmra.mxu3 %vm261_vm0, %v1980_v6  ;;  %288 = vmatpush.bf16.msra.mxu1 %v1844_v8  ;;  %v1842_v17 = vld [vmem:[%s2424_s0 + $0x60] sm:$0xff]  ;;  %v1841_v21 = vld [vmem:[%s2424_s0 + $0x58] sm:$0xff]  ;;  %v1827_v23 = vld [vmem:[%s2425_s1 + $0x2c] sm:$0xf] }
   0x8   :  { %307 = vmatpush.bf16.msra.mxu2 %v1852_v9  ;;  %v1850_v18 = vld [vmem:[%s2424_s0 + $0xa0] sm:$0xff]  ;;  %v1849_v22 = vld [vmem:[%s2424_s0 + $0x98] sm:$0xff]  ;;  %v1832_v27 = vld [vmem:[%s2424_s0 + $0x10] sm:$0xff] }
   0x9   :  { %v1260_v24 = vld [vmem:[%s2425_s1 + $0x38] sm:$0xf0]  ;;  %v1858_v25 = vld [vmem:[%s2424_s0 + $0xe0] sm:$0xff]  ;;  %v1840_v28 = vld [vmem:[%s2424_s0 + $0x50] sm:$0xff] }
   0xa   :  { %546 = vmatpush.bf16.msrb.mxu3 %v1861_v11  ;;  %270 = vmatpush.bf16.msra.mxu0 %v1835_v12  ;;  %v2041_v26 = vor.u32 %v1827_v23, %v1260_v24  ;;  %v1848_v29 = vld [vmem:[%s2424_s0 + $0x90] sm:$0xff]  ;;  %v1857_v30 = vld [vmem:[%s2424_s0 + $0xd8] sm:$0xff]  ;;  %v1831_v31 = vld [vmem:[%s2424_s0 + $0x8] sm:$0xff] }
   0xb   :  { %289 = vmatpush.bf16.msra.mxu1 %v1843_v13  ;;  %v1839_v32 = vld [vmem:[%s2424_s0 + $0x48] sm:$0xff]  ;;  %v1830_v34 = vld [vmem:[%s2424_s0] sm:$0xff]  ;;  %v1856_v37 = vld [vmem:[%s2424_s0 + $0xd0] sm:$0xff] }
   0xc   :  { %308 = vmatpush.bf16.msra.mxu2 %v1851_v14  ;;  %v1847_v33 = vld [vmem:[%s2424_s0 + $0x88] sm:$0xff]  ;;  %v1838_v35 = vld [vmem:[%s2424_s0 + $0x40] sm:$0xff]  ;;  %v1824_v39 = vld [vmem:[%s2425_s1 + $0xc] sm:$0xf0] }
   0xd   :  { %v1846_v36 = vld [vmem:[%s2424_s0 + $0x80] sm:$0xff]  ;;  %v1236_v41 = vld [vmem:[%s2425_s1 + $0x10] sm:$0xf0]  ;;  %v1242_v42 = vld [vmem:[%s2425_s1 + $0x8] sm:$0xf] }
   0xe   :  { %547 = vmatpush.bf16.msrb.mxu3 %v1860_v15  ;;  %271 = vmatpush.bf16.msra.mxu0 %v1834_v16  ;;  %v1234_v38 = vld [vmem:[%s2425_s1] sm:$0xf]  ;;  %v1822_v40 = vld [vmem:[%s2425_s1 + $0x4] sm:$0xf]  ;;  %v1825_v43 = vld [vmem:[%s2425_s1 + $0x14] sm:$0xf0] }
   0xf   :  { %290 = vmatpush.bf16.msra.mxu1 %v1842_v17  ;;  %v1879_v44 = vld [vmem:[%s2424_s0 + $0x188] sm:$0xff]  ;;  %v1870_v45 = vld [vmem:[%s2424_s0 + $0x140] sm:$0xff]  ;;  %v2102_v46 = vor.u32 %v1824_v39, %v1234_v38  ;;  %v2107_v48 = vor.u32 %v1822_v40, %v1236_v41  ;;  %v2109_v49 = vor.u32 %v1825_v43, %v1242_v42  ;;  %v1869_v52 = vld [vmem:[%s2424_s0 + $0x138] sm:$0xff] }
  0x10   :  { %309 = vmatpush.bf16.msra.mxu2 %v1850_v18  ;;  %v1855_v47 = vld [vmem:[%s2424_s0 + $0xc8] sm:$0xff]  ;;  %v1878_v50 = vld [vmem:[%s2424_s0 + $0x180] sm:$0xff]  ;;  %v1904_v53 = vld [vmem:[%s2424_s0 + $0x250] sm:$0xff] }
  0x11   :  { %v1887_v51 = vld [vmem:[%s2424_s0 + $0x1c8] sm:$0xff]  ;;  %v1877_v54 = vld [vmem:[%s2424_s0 + $0x178] sm:$0xff]  ;;  %v1886_v55 = vld [vmem:[%s2424_s0 + $0x1c0] sm:$0xff] }
  0x12   :  { %548 = vmatpush.bf16.msrb.mxu3 %v1859_v19  ;;  %272 = vmatpush.bf16.msra.mxu0 %v1833_v20  ;;  %v1868_v56 = vld [vmem:[%s2424_s0 + $0x130] sm:$0xff]  ;;  %v1885_v58 = vld [vmem:[%s2424_s0 + $0x1b8] sm:$0xff]  ;;  %v1867_v59 = vld [vmem:[%s2424_s0 + $0x128] sm:$0xff] }
  0x13   :  { %291 = vmatpush.bf16.msra.mxu1 %v1841_v21  ;;  %v1876_v57 = vld [vmem:[%s2424_s0 + $0x170] sm:$0xff]  ;;  %v1875_v60 = vld [vmem:[%s2424_s0 + $0x168] sm:$0xff]  ;;  %v1250_v61 = vld [vmem:[%s2425_s1 + $0x20] sm:$0xf] }
  0x14   :  { %310 = vmatpush.bf16.msra.mxu2 %v1849_v22  ;;  %v1828_v62 = vld [vmem:[%s2425_s1 + $0x2c] sm:$0xf0]  ;;  %v1826_v63 = vld [vmem:[%s2425_s1 + $0x24] sm:$0xf]  ;;  %v1252_v0 = vld [vmem:[%s2425_s1 + $0x30] sm:$0xf0] }
  0x15   :  { %v1258_v1 = vld [vmem:[%s2425_s1 + $0x28] sm:$0xf]  ;;  %v1829_v2 = vld [vmem:[%s2425_s1 + $0x34] sm:$0xf0]  ;;  %v1884_v3 = vld [vmem:[%s2424_s0 + $0x1b0] sm:$0xff]  ;;  %v2172_v5 = vor.u32 %v1828_v62, %v1250_v61  ;;  %v2174_v7 = vor.u32 %v1826_v63, %v1252_v0  ;;  %v1941_v63 = vmov 0  }
  0x16   :  { %549 = vmatpush.bf16.msrb.mxu3 %v1858_v25  ;;  %273 = vmatpush.bf16.msra.mxu0 %v1832_v27  ;;  %v1866_v4 = vld [vmem:[%s2424_s0 + $0x120] sm:$0xff]  ;;  %v2176_v8 = vor.u32 %v1829_v2, %v1258_v1  ;;  %v1883_v10 = vld [vmem:[%s2424_s0 + $0x1a8] sm:$0xff]  ;;  %v1865_v11 = vld [vmem:[%s2424_s0 + $0x118] sm:$0xff] }
  0x17   :  { %1365 = vmatmul.msk.bf16.gmra.mxu3 %vm261_vm0, %v2041_v26  ;;  %292 = vmatpush.bf16.msra.mxu1 %v1840_v28  ;;  %v1874_v9 = vld [vmem:[%s2424_s0 + $0x160] sm:$0xff]  ;;  %v1873_v12 = vld [vmem:[%s2424_s0 + $0x158] sm:$0xff]  ;;  %v1864_v14 = vld [vmem:[%s2424_s0 + $0x110] sm:$0xff] }
  0x18   :  { %311 = vmatpush.bf16.msra.mxu2 %v1848_v29  ;;  %v1882_v13 = vld [vmem:[%s2424_s0 + $0x1a0] sm:$0xff]  ;;  %v1872_v15 = vld [vmem:[%s2424_s0 + $0x150] sm:$0xff]  ;;  %v1881_v16 = vld [vmem:[%s2424_s0 + $0x198] sm:$0xff]  ;;  %1939 = vset.pattern.permute.xlu0 %v1941_v63 }
  0x19   :  { %v1863_v17 = vld [vmem:[%s2424_s0 + $0x108] sm:$0xff]  ;;  %v1880_v20 = vld [vmem:[%s2424_s0 + $0x190] sm:$0xff]  ;;  %v1894_v23 = vld [vmem:[%s2424_s0 + $0x200] sm:$0xff]  ;;  %1940 = vset.pattern.permute.xlu1 %v1941_v63 }
  0x1a   :  { %550 = vmatpush.bf16.msrb.mxu3 %v1857_v30  ;;  %274 = vmatpush.bf16.msra.mxu0 %v1831_v31  ;;  %v1895_v18 = vld [vmem:[%s2424_s0 + $0x208] sm:$0xff]  ;;  %v1912_v22 = vld [vmem:[%s2424_s0 + $0x290] sm:$0xff]  ;;  %v1902_v24 = vld [vmem:[%s2424_s0 + $0x240] sm:$0xff] }
  0x1b   :  { %293 = vmatpush.bf16.msra.mxu1 %v1839_v32  ;;  %v1871_v19 = vld [vmem:[%s2424_s0 + $0x148] sm:$0xff]  ;;  %v1929_v27 = vld [vmem:[%s2424_s0 + $0x318] sm:$0xff]  ;;  %v1910_v30 = vld [vmem:[%s2424_s0 + $0x280] sm:$0xff] }
  0x1c   :  { %312 = vmatpush.bf16.msra.mxu2 %v1847_v33  ;;  %v1903_v21 = vld [vmem:[%s2424_s0 + $0x248] sm:$0xff]  ;;  %v1893_v28 = vld [vmem:[%s2424_s0 + $0x1f8] sm:$0xff]  ;;  %v1892_v31 = vld [vmem:[%s2424_s0 + $0x1f0] sm:$0xff] }
  0x1d   :  { %v1911_v25 = vld [vmem:[%s2424_s0 + $0x288] sm:$0xff]  ;;  %v1901_v29 = vld [vmem:[%s2424_s0 + $0x238] sm:$0xff]  ;;  %v1900_v32 = vld [vmem:[%s2424_s0 + $0x230] sm:$0xff] }
  0x1e   :  { %551 = vmatpush.bf16.msrb.mxu3 %v1856_v37  ;;  %275 = vmatpush.bf16.msra.mxu0 %v1830_v34  ;;  %v1909_v33 = vld [vmem:[%s2424_s0 + $0x278] sm:$0xff]  ;;  %v1891_v34 = vld [vmem:[%s2424_s0 + $0x1e8] sm:$0xff]  ;;  %v1890_v37 = vld [vmem:[%s2424_s0 + $0x1e0] sm:$0xff] }
  0x1f   :  { %294 = vmatpush.bf16.msra.mxu1 %v1838_v35  ;;  %v1899_v35 = vld [vmem:[%s2424_s0 + $0x228] sm:$0xff]  ;;  %v1898_v38 = vld [vmem:[%s2424_s0 + $0x220] sm:$0xff]  ;;  %v1889_v40 = vld [vmem:[%s2424_s0 + $0x1d8] sm:$0xff] }
  0x20   :  { %313 = vmatpush.bf16.msra.mxu2 %v1846_v36  ;;  %v1908_v36 = vld [vmem:[%s2424_s0 + $0x270] sm:$0xff]  ;;  %v1907_v39 = vld [vmem:[%s2424_s0 + $0x268] sm:$0xff]  ;;  %v1897_v41 = vld [vmem:[%s2424_s0 + $0x218] sm:$0xff] }
  0x21   :  { %276 = vmatmul.bf16.vlgmr.msra.gmra.mxu0 %v2102_v46  ;;  %v1906_v42 = vld [vmem:[%s2424_s0 + $0x260] sm:$0xff]  ;;  %v1888_v43 = vld [vmem:[%s2424_s0 + $0x1d0] sm:$0xff]  ;;  %v1921_v0 = vld [vmem:[%s2424_s0 + $0x2d8] sm:$0xff] }
  0x22   :  { %564 = vmatpush.bf16.msrb.mxu0 %v1870_v45  ;;  %552 = vmatpush.bf16.msrb.mxu3 %v1855_v47  ;;  %v1905_v45 = vld [vmem:[%s2424_s0 + $0x258] sm:$0xff]  ;;  %v1920_v47 = vld [vmem:[%s2424_s0 + $0x2d0] sm:$0xff]  ;;  %v1187_v61 = vld [vmem:[%s2426_s2] sm:$0xff] }
  0x23   :  { %295 = vmatmul.bf16.vlgmr.msra.gmra.mxu1 %v2107_v48  ;;  %314 = vmatmul.bf16.vlgmr.msra.gmra.mxu2 %v2109_v49  ;;  %v1914_v62 = vld [vmem:[%s2424_s0 + $0x2a0] sm:$0xff]  ;;  %v1913_v1 = vld [vmem:[%s2424_s0 + $0x298] sm:$0xff]  ;;  %v1189_v2 = vld [vmem:[%s2426_s2 + $0x10] sm:$0xff] }
  0x24   :  { %609 = vmatpush.bf16.msrb.mxu2 %v1879_v44  ;;  %583 = vmatpush.bf16.msrb.mxu1 %v1878_v50  ;;  %v1896_v44 = vld [vmem:[%s2424_s0 + $0x210] sm:$0xff] }
  0x25   :  { %v1928_v50 = vld [vmem:[%s2424_s0 + $0x310] sm:$0xff]  ;;  %1193 = vperm.xlu0 %1939, %v1187_v61   ;;  %1203 = vperm.xlu1 %1940, %v1189_v2  }
  0x26   :  { %826 = vmatpush.bf16.msra.mxu3 %v1887_v51  ;;  %565 = vmatpush.bf16.msrb.mxu0 %v1869_v52  ;;  %v1927_v51 = vld [vmem:[%s2424_s0 + $0x308] sm:$0xff] }
  0x27   :  { %553 = vmatmul.bf16.vlgmr.msrb.gmra.mxu3 %v2102_v46  ;;  %v1919_v52 = vld [vmem:[%s2424_s0 + $0x2c8] sm:$0xff] }
  0x28   :  { %890 = vmatpush.bf16.msra.mxu2 %v1904_v53  ;;  %584 = vmatpush.bf16.msrb.mxu1 %v1877_v54  ;;  %v1926_v53 = vld [vmem:[%s2424_s0 + $0x300] sm:$0xff] }
  0x29   :  { %v1918_v54 = vld [vmem:[%s2424_s0 + $0x2c0] sm:$0xff] }
  0x2a   :  { %827 = vmatpush.bf16.msra.mxu3 %v1886_v55  ;;  %566 = vmatpush.bf16.msrb.mxu0 %v1868_v56  ;;  %v1925_v55 = vld [vmem:[%s2424_s0 + $0x2f8] sm:$0xff] }
  0x2b   :  { %v1917_v56 = vld [vmem:[%s2424_s0 + $0x2b8] sm:$0xff] }
  0x2c   :  { %585 = vmatpush.bf16.msrb.mxu1 %v1876_v57  ;;  %v1924_v57 = vld [vmem:[%s2424_s0 + $0x2f0] sm:$0xff] }
  0x2e   :  { %828 = vmatpush.bf16.msra.mxu3 %v1885_v58  ;;  %567 = vmatpush.bf16.msrb.mxu0 %v1867_v59  ;;  %v1916_v58 = vld [vmem:[%s2424_s0 + $0x2b0] sm:$0xff]  ;;  %v1915_v59 = vld [vmem:[%s2424_s0 + $0x2a8] sm:$0xff] }
  0x30   :  { %586 = vmatpush.bf16.msrb.mxu1 %v1875_v60  ;;  %v1922_v60 = vld [vmem:[%s2424_s0 + $0x2e0] sm:$0xff] }
  0x31   :  { %281 = vmatmul.bf16.gmra.mxu0 %v2172_v5 }
  0x32   :  { %829 = vmatpush.bf16.msra.mxu3 %v1884_v3  ;;  %568 = vmatpush.bf16.msrb.mxu0 %v1866_v4  ;;  %v1188_v3 = vld [vmem:[%s2426_s2 + $0x8] sm:$0xff]  ;;  %v1190_v4 = vld [vmem:[%s2426_s2 + $0x18] sm:$0xff] }
  0x33   :  { %300 = vmatmul.bf16.gmra.mxu1 %v2174_v7  ;;  %319 = vmatmul.bf16.gmra.mxu2 %v2176_v8 }
  0x34   :  { %587 = vmatpush.bf16.msrb.mxu1 %v1874_v9  ;;  %1198 = vperm.xlu0 %1939, %v1188_v3  }
  0x35   :  { %1208 = vperm.xlu1 %1940, %v1190_v4  }
  0x36   :  { %830 = vmatpush.bf16.msra.mxu3 %v1883_v10  ;;  %569 = vmatpush.bf16.msrb.mxu0 %v1865_v11 }
  0x37   :  { %558 = vmatmul.bf16.gmra.mxu3 %v2172_v5 }
  0x38   :  { %588 = vmatpush.bf16.msrb.mxu1 %v1873_v12 }
  0x3a   :  { %831 = vmatpush.bf16.msra.mxu3 %v1882_v13  ;;  %570 = vmatpush.bf16.msrb.mxu0 %v1864_v14 }
  0x3c   :  { %589 = vmatpush.bf16.msrb.mxu1 %v1872_v15 }
  0x3e   :  { %832 = vmatpush.bf16.msra.mxu3 %v1881_v16  ;;  %571 = vmatpush.bf16.msrb.mxu0 %v1863_v17 }
  0x40   :  { %590 = vmatpush.bf16.msrb.mxu1 %v1871_v19 }
  0x41   :  { %572 = vmatmul.bf16.vlgmr.msrb.gmra.mxu0 %v2107_v48 }
  0x42   :  { %845 = vmatpush.bf16.msra.mxu0 %v1895_v18  ;;  %833 = vmatpush.bf16.msra.mxu3 %v1880_v20 }
  0x43   :  { %591 = vmatmul.bf16.vlgmr.msrb.gmra.mxu1 %v2109_v49  ;;  %1516 = vmatmul.msk.bf16.vlgmr.msrb.gmra.mxu2 %vm261_vm0, %v1980_v6 }
  0x44   :  { %864 = vmatpush.bf16.msra.mxu1 %v1903_v21  ;;  %1167 = vmatpush.bf16.msrb.mxu2 %v1929_v27 }
  0x46   :  { %1103 = vmatpush.bf16.msrb.mxu3 %v1912_v22  ;;  %846 = vmatpush.bf16.msra.mxu0 %v1894_v23 }
  0x47   :  { %834 = vmatmul.bf16.vlgmr.msra.gmra.mxu3 %v2102_v46 }
  0x48   :  { %865 = vmatpush.bf16.msra.mxu1 %v1902_v24 }
  0x4a   :  { %1104 = vmatpush.bf16.msrb.mxu3 %v1911_v25  ;;  %847 = vmatpush.bf16.msra.mxu0 %v1893_v28 }
  0x4c   :  { %866 = vmatpush.bf16.msra.mxu1 %v1901_v29 }
  0x4e   :  { %1105 = vmatpush.bf16.msrb.mxu3 %v1910_v30  ;;  %848 = vmatpush.bf16.msra.mxu0 %v1892_v31 }
  0x50   :  { %867 = vmatpush.bf16.msra.mxu1 %v1900_v32 }
  0x51   :  { %577 = vmatmul.bf16.gmra.mxu0 %v2174_v7 }
  0x52   :  { %1106 = vmatpush.bf16.msrb.mxu3 %v1909_v33  ;;  %849 = vmatpush.bf16.msra.mxu0 %v1891_v34 }
  0x53   :  { %596 = vmatmul.bf16.gmra.mxu1 %v2176_v8  ;;  %1517 = vmatmul.msk.bf16.gmra.mxu2 %vm261_vm0, %v2041_v26 }
  0x54   :  { %868 = vmatpush.bf16.msra.mxu1 %v1899_v35 }
  0x56   :  { %1107 = vmatpush.bf16.msrb.mxu3 %v1908_v36  ;;  %850 = vmatpush.bf16.msra.mxu0 %v1890_v37 }
  0x57   :  { %839 = vmatmul.bf16.gmra.mxu3 %v2172_v5 }
  0x58   :  { %869 = vmatpush.bf16.msra.mxu1 %v1898_v38 }
  0x5a   :  { %1108 = vmatpush.bf16.msrb.mxu3 %v1907_v39  ;;  %851 = vmatpush.bf16.msra.mxu0 %v1889_v40 }
  0x5c   :  { %870 = vmatpush.bf16.msra.mxu1 %v1897_v41 }
  0x5e   :  { %1109 = vmatpush.bf16.msrb.mxu3 %v1906_v42  ;;  %852 = vmatpush.bf16.msra.mxu0 %v1888_v43 }
  0x60   :  { %871 = vmatpush.bf16.msra.mxu1 %v1896_v44 }
  0x61   :  { %853 = vmatmul.bf16.vlgmr.msra.gmra.mxu0 %v2107_v48 }
  0x62   :  { %1110 = vmatpush.bf16.msrb.mxu3 %v1905_v45  ;;  %1122 = vmatpush.bf16.msrb.mxu0 %v1920_v47 }
  0x63   :  { %872 = vmatmul.bf16.vlgmr.msra.gmra.mxu1 %v2109_v49  ;;  %1668 = vmatmul.msk.bf16.vlgmr.msra.gmra.mxu2 %vm261_vm0, %v1980_v6 }
  0x64   :  { %1141 = vmatpush.bf16.msrb.mxu1 %v1928_v50 }
  0x66   :  { %1930 = vmatpush.bf16.msra.mxu3 %v1920_v47  ;;  %1123 = vmatpush.bf16.msrb.mxu0 %v1919_v52 }
  0x67   :  { %1111 = vmatmul.bf16.vlgmr.msrb.gmra.mxu3 %v2102_v46  ;;  %v1923_v46 = vld [vmem:[%s2424_s0 + $0x2e8] sm:$0xff] }
  0x68   :  { %1142 = vmatpush.bf16.msrb.mxu1 %v1927_v51 }
  0x6a   :  { %1931 = vmatpush.bf16.msra.mxu3 %v1919_v52  ;;  %1124 = vmatpush.bf16.msrb.mxu0 %v1918_v54 }
  0x6c   :  { %1143 = vmatpush.bf16.msrb.mxu1 %v1926_v53 }
  0x6e   :  { %1932 = vmatpush.bf16.msra.mxu3 %v1918_v54  ;;  %1125 = vmatpush.bf16.msrb.mxu0 %v1917_v56 }
  0x70   :  { %1144 = vmatpush.bf16.msrb.mxu1 %v1925_v55 }
  0x71   :  { %858 = vmatmul.bf16.gmra.mxu0 %v2174_v7 }
  0x72   :  { %1933 = vmatpush.bf16.msra.mxu3 %v1917_v56  ;;  %1126 = vmatpush.bf16.msrb.mxu0 %v1916_v58 }
  0x73   :  { %877 = vmatmul.bf16.gmra.mxu1 %v2176_v8  ;;  %1669 = vmatmul.msk.bf16.gmra.mxu2 %vm261_vm0, %v2041_v26 }
  0x74   :  { %1145 = vmatpush.bf16.msrb.mxu1 %v1924_v57 }
  0x76   :  { %1934 = vmatpush.bf16.msra.mxu3 %v1916_v58  ;;  %1127 = vmatpush.bf16.msrb.mxu0 %v1915_v59 }
  0x77   :  { %1116 = vmatmul.bf16.gmra.mxu3 %v2172_v5 }
  0x78   :  { %1146 = vmatpush.bf16.msrb.mxu1 %v1923_v46 }
  0x7a   :  { %1935 = vmatpush.bf16.msra.mxu3 %v1915_v59  ;;  %1128 = vmatpush.bf16.msrb.mxu0 %v1914_v62 }
  0x7c   :  { %1147 = vmatpush.bf16.msrb.mxu1 %v1922_v60 }
  0x7e   :  { %1936 = vmatpush.bf16.msra.mxu3 %v1914_v62  ;;  %1129 = vmatpush.bf16.msrb.mxu0 %v1913_v1 }
  0x80   :  { %1148 = vmatpush.bf16.msrb.mxu1 %v1921_v0 }
  0x81   :  { %1130 = vmatmul.bf16.vlgmr.msrb.gmra.mxu0 %v2107_v48 }
  0x82   :  { %1937 = vmatpush.bf16.msra.mxu3 %v1913_v1 }
  0x83   :  { %1149 = vmatmul.bf16.vlgmr.msrb.gmra.mxu1 %v2109_v49  ;;  %1820 = vmatmul.msk.bf16.vlgmr.msrb.gmra.mxu2 %vm261_vm0, %v1980_v6 }
  0x87   :  { %1135 = vmatmul.bf16.vlgmr.msra.gmra.mxu3 %v2174_v7 }
  0x8a   :  { %v334_v5 = vpop.f32.mrf.mxu3 }
  0x92   :  { %v336_v9 = vpop.f32.mrf.mxu3 }
  0x93   :  { %1154 = vmatmul.bf16.gmra.mxu1 %v2176_v8  ;;  %1821 = vmatmul.msk.bf16.gmra.mxu2 %vm261_vm0, %v2041_v26 }
  0x9a   :  { %v339_v48 = vpop.f32.mrf.mxu3 }
  0x9e   :  { %v277_v49 = vpop.f32.mrf.mxu0 }
  0xa0   :  { %v296_v10 = vpop.f32.mrf.mxu1 }
  0xa1   :  { %v297_v11 = vadd.f32 %v296_v10, %v277_v49 }
  0xa2   :  { %v341_v6 = vpop.f32.mrf.mxu3 }
  0xa6   :  { %v315_v12 = vpop.f32.mrf.mxu2  ;;  %v279_v7 = vpop.f32.mrf.mxu0 }
  0xa7   :  { %v316_v13 = vadd.f32 %v315_v12, %v297_v11 }
  0xa8   :  { %v298_v14 = vpop.f32.mrf.mxu1 }
  0xa9   :  { %v2378_v15 = vadd.f32 %v334_v5, %v316_v13  ;;  %v299_v16 = vadd.f32 %v298_v14, %v279_v7 }
  0xaa   :  { %v554_v17 = vpop.f32.mrf.mxu3 }
  0xae   :  { %v317_v18 = vpop.f32.mrf.mxu2  ;;  %v282_v20 = vpop.f32.mrf.mxu0 }
  0xaf   :  { %v318_v19 = vadd.f32 %v317_v18, %v299_v16 }
  0xb0   :  { %v301_v8 = vpop.f32.mrf.mxu1 }
  0xb1   :  { %v2380_v21 = vadd.f32 %v336_v9, %v318_v19  ;;  %v302_v26 = vadd.f32 %v301_v8, %v282_v20 }
  0xb2   :  { %v556_v22 = vpop.f32.mrf.mxu3 }
  0xb6   :  { %v320_v23 = vpop.f32.mrf.mxu2  ;;  %v284_v25 = vpop.f32.mrf.mxu0 }
  0xb7   :  { %v321_v24 = vadd.f32 %v320_v23, %v302_v26 }
  0xb8   :  { %v303_v27 = vpop.f32.mrf.mxu1 }
  0xb9   :  { %v2382_v28 = vadd.f32 %v339_v48, %v321_v24  ;;  %v304_v29 = vadd.f32 %v303_v27, %v284_v25 }
  0xba   :  { %v559_v30 = vpop.f32.mrf.mxu3 }
  0xbe   :  { %v322_v31 = vpop.f32.mrf.mxu2  ;;  %v573_v33 = vpop.f32.mrf.mxu0 }
  0xbf   :  { %v323_v32 = vadd.f32 %v322_v31, %v304_v29  ;;  %v574_v34 = vadd.f32 %v573_v33, %v554_v17 }
  0xc0   :  { %v592_v35 = vpop.f32.mrf.mxu1 }
  0xc1   :  { %v2384_v36 = vadd.f32 %v341_v6, %v323_v32  ;;  %v593_v37 = vadd.f32 %v592_v35, %v574_v34  ;;  %v1194_v32 = vpop.permute.xlu0 %1193 }
  0xc2   :  { %v561_v38 = vpop.f32.mrf.mxu3 }
  0xc6   :  { %v611_v39 = vpop.f32.mrf.mxu2  ;;  %v575_v41 = vpop.f32.mrf.mxu0 }
  0xc7   :  { %v612_v40 = vadd.f32 %v611_v39, %v593_v37  ;;  %v576_v42 = vadd.f32 %v575_v41, %v556_v22 }
  0xc8   :  { %v594_v43 = vpop.f32.mrf.mxu1 }
  0xc9   :  { %v621_v44 = vmax.f32 %v2378_v15, %v612_v40  ;;  %v595_v45 = vadd.f32 %v594_v43, %v576_v42 }
  0xca   :  { %v835_v47 = vpop.f32.mrf.mxu3 }
  0xce   :  { %v613_v50 = vpop.f32.mrf.mxu2  ;;  %v578_v52 = vpop.f32.mrf.mxu0 }
  0xcf   :  { %v2387_v51 = vadd.f32 %v613_v50, %v595_v45  ;;  %v579_v53 = vadd.f32 %v578_v52, %v559_v30 }
  0xd0   :  { %v597_v54 = vpop.f32.mrf.mxu1 }
  0xd1   :  { %v622_v55 = vmax.f32 %v2380_v21, %v2387_v51  ;;  %v598_v56 = vadd.f32 %v597_v54, %v579_v53 }
  0xd2   :  { %v837_v57 = vpop.f32.mrf.mxu3 }
  0xd6   :  { %v616_v58 = vpop.f32.mrf.mxu2  ;;  %v580_v59 = vpop.f32.mrf.mxu0 }
  0xd7   :  { %v2391_v46 = vadd.f32 %v616_v58, %v598_v56  ;;  %v581_v60 = vadd.f32 %v580_v59, %v561_v38  ;;  %v1199_v56 = vpop.permute.xlu0 %1198 }
  0xd8   :  { %v599_v61 = vpop.f32.mrf.mxu1 }
  0xd9   :  { %v623_v62 = vmax.f32 %v2382_v28, %v2391_v46  ;;  %v600_v63 = vadd.f32 %v599_v61, %v581_v60 }
  0xda   :  { %v840_v0 = vpop.f32.mrf.mxu3 }
  0xde   :  { %v618_v1 = vpop.f32.mrf.mxu2  ;;  %v854_v3 = vpop.f32.mrf.mxu0 }
  0xdf   :  { %v2395_v2 = vadd.f32 %v618_v1, %v600_v63  ;;  %v855_v8 = vadd.f32 %v854_v3, %v835_v47 }
  0xe0   :  { %v873_v4 = vpop.f32.mrf.mxu1 }
  0xe1   :  { %v624_v5 = vmax.f32 %v2384_v36, %v2395_v2  ;;  %v874_v23 = vadd.f32 %v873_v4, %v855_v8 }
  0xe2   :  { %v842_v9 = vpop.f32.mrf.mxu3 }
  0xe6   :  { %v892_v48 = vpop.f32.mrf.mxu2  ;;  %v856_v49 = vpop.f32.mrf.mxu0 }
  0xe7   :  { %v893_v27 = vadd.f32 %v892_v48, %v874_v23  ;;  %v857_v33 = vadd.f32 %v856_v49, %v837_v57 }
  0xe8   :  { %v875_v10 = vpop.f32.mrf.mxu1 }
  0xe9   :  { %v876_v38 = vadd.f32 %v875_v10, %v857_v33  ;;  %v1204_v10 = vpop.permute.xlu1 %1203 }
  0xea   :  { %v1112_v11 = vpop.f32.mrf.mxu3 }
  0xee   :  { %v894_v6 = vpop.f32.mrf.mxu2  ;;  %v859_v12 = vpop.f32.mrf.mxu0 }
  0xef   :  { %v895_v43 = vadd.f32 %v894_v6, %v876_v38  ;;  %v860_v52 = vadd.f32 %v859_v12, %v840_v0 }
  0xf0   :  { %v878_v13 = vpop.f32.mrf.mxu1 }
  0xf1   :  { %v879_v57 = vadd.f32 %v878_v13, %v860_v52  ;;  %v1209_v28 = vpop.permute.xlu1 %1208 }
  0xf2   :  { %v1114_v7 = vpop.f32.mrf.mxu3 }
  0xf6   :  { %v897_v14 = vpop.f32.mrf.mxu2  ;;  %v861_v15 = vpop.f32.mrf.mxu0 }
  0xf7   :  { %v898_v63 = vadd.f32 %v897_v14, %v879_v57  ;;  %v862_v4 = vadd.f32 %v861_v15, %v842_v9 }
  0xf8   :  { %v880_v16 = vpop.f32.mrf.mxu1 }
  0xf9   :  { %v881_v51 = vadd.f32 %v880_v16, %v862_v4 }
  0xfa   :  { %v1117_v17 = vpop.f32.mrf.mxu3 }
  0xfe   :  { %v899_v18 = vpop.f32.mrf.mxu2  ;;  %v1131_v19 = vpop.f32.mrf.mxu0 }
  0xff   :  { %v1132_v26 = vadd.f32 %v1131_v19, %v1112_v11 }
 0x100   :  { %v1150_v20 = vpop.f32.mrf.mxu1 }
 0x101   :  { %v1151_v24 = vadd.f32 %v1150_v20, %v1132_v26 }
 0x102   :  { %v1119_v22 = vpop.f32.mrf.mxu3 }
 0x106   :  { %v1169_v25 = vpop.f32.mrf.mxu2  ;;  %v1133_v30 = vpop.f32.mrf.mxu0 }
 0x107   :  { %v1170_v29 = vadd.f32 %v1169_v25, %v1151_v24  ;;  %v1134_v35 = vadd.f32 %v1133_v30, %v1114_v7  ;;  %v900_v7 = vadd.f32 %v899_v18, %v881_v51 }
 0x108   :  { %v1152_v31 = vpop.f32.mrf.mxu1 }
 0x109   :  { %v1179_v34 = vmax.f32 %v893_v27, %v1170_v29  ;;  %v1153_v39 = vadd.f32 %v1152_v31, %v1134_v35 }
 0x10a   :  { %v1136_v41 = vpop.f32.mrf.mxu3 }
 0x10b   :  { %v1183_v37 = vmax.f32 %v621_v44, %v1179_v34  ;;  %v1137_v58 = vadd.f32 %v1136_v41, %v1117_v17 }
 0x10d   :  { %v1211_v40 = vadd.f32 %v1194_v32, %v1183_v37 }
 0x10e   :  { %v1171_v42 = vpop.f32.mrf.mxu2 }
 0x10f   :  { %v1215_v45 = vmax.f32 %v1211_v40, 0.0  ;;  %v1172_v47 = vadd.f32 %v1171_v42, %v1153_v39 }
 0x110   :  { %v1155_v50 = vpop.f32.mrf.mxu1 }
 0x111   :  { %v1219_v53 = vpack.c.bf16 %v1215_v45, %v1215_v45  ;;  %v1180_v54 = vmax.f32 %v895_v43, %v1172_v47  ;;  %v1156_v59 = vadd.f32 %v1155_v50, %v1137_v58 }
 0x112   :  { %v1138_v3 = vpop.f32.mrf.mxu3 }
 0x113   :  { %1224 = vst.msk [vmem:[%s2427_s3] sm:$0xf] %vm1223_vm1, %v1219_v53  ;;  %v1184_v44 = vmax.f32 %v622_v55, %v1180_v54  ;;  %v1139_v6 = vadd.f32 %v1138_v3, %v1119_v22 }
 0x115   :  { %v1212_v60 = vadd.f32 %v1199_v56, %v1184_v44 }
 0x116   :  { %v1174_v61 = vpop.f32.mrf.mxu2 }
 0x117   :  { %v1216_v1 = vmax.f32 %v1212_v60, 0.0  ;;  %v1175_v0 = vadd.f32 %v1174_v61, %v1156_v59 }
 0x118   :  { %v1157_v11 = vpop.f32.mrf.mxu1 }
 0x119   :  { %v1220_v48 = vpack.c.bf16 %v1216_v1, %v1216_v1  ;;  %v1181_v49 = vmax.f32 %v898_v63, %v1175_v0  ;;  %v1158_v12 = vadd.f32 %v1157_v11, %v1139_v6 }
 0x11b   :  { %1225 = vst.msk [vmem:[%s2427_s3 + $0x4] sm:$0xf] %vm1223_vm1, %v1220_v48  ;;  %v1185_v21 = vmax.f32 %v623_v62, %v1181_v49 }
 0x11d   :  { %v1213_v55 = vadd.f32 %v1204_v10, %v1185_v21 }
 0x11e   :  { %v1176_v13 = vpop.f32.mrf.mxu2 }
 0x11f   :  { %v1217_v9 = vmax.f32 %v1213_v55, 0.0  ;;  %v1177_v14 = vadd.f32 %v1176_v13, %v1158_v12 }
 0x121   :  { %v1221_v15 = vpack.c.bf16 %v1217_v9, %v1217_v9  ;;  %v1182_v17 = vmax.f32 %v900_v7, %v1177_v14 }
 0x123   :  { %1226 = vst.msk [vmem:[%s2427_s3 + $0x8] sm:$0xf] %vm1223_vm1, %v1221_v15  ;;  %v1186_v19 = vmax.f32 %v624_v5, %v1182_v17 }
 0x125   :  { %v1214_v46 = vadd.f32 %v1209_v28, %v1186_v19 }
 0x127   :  { %v1218_v62 = vmax.f32 %v1214_v46, 0.0 }
 0x129   :  { %v1222_v16 = vpack.c.bf16 %v1218_v62, %v1218_v62 }
 0x12b   :  { %1227 = vst.msk [vmem:[%s2427_s3 + $0xc] sm:$0xf] %vm1223_vm1, %v1222_v16 }

// kernel: net_forward.5
= control target key start
LH: loop header
LB: loop body
LE: loop exit
PB: predicated region body
PF: predicated region fallthrough
CT: control target
= control target key end

     0   :  { %s1309_s0 = inlined_call_operand.vmem [shape: bf16[2,800], index: 0, kind: input, shape index: {}]   ;;  %s1310_s1 = inlined_call_operand.vmem [shape: bf16[800,120], index: 1, kind: input, shape index: {}]   ;;  %s1311_s2 = inlined_call_operand.vmem [shape: f32[1,120], index: 2, kind: input, shape index: {}]   ;;  %s1312_s3 = inlined_call_operand.vmem [shape: bf16[120,84], index: 3, kind: input, shape index: {}]   ;;  %s1313_s4 = inlined_call_operand.vmem [shape: f32[1,84], index: 4, kind: input, shape index: {}]   ;;  %s1314_s5 = inlined_call_operand.vmem [shape: bf16[84,10], index: 5, kind: input, shape index: {}]   ;;  %s1315_s6 = inlined_call_operand.vmem [shape: f32[1,10], index: 6, kind: input, shape index: {}]   ;;  %s1316_s7 = inlined_call_operand.hbm [shape: f32[2,10], index: 7, kind: output, shape index: {}]  }
   0x1   :  { %v976_v0 = vld [vmem:[%s1310_s1 + $0x38] sm:$0xff]  ;;  %v975_v3 = vld [vmem:[%s1310_s1 + $0x30] sm:$0xff]  ;;  %v974_v8 = vld [vmem:[%s1310_s1 + $0x28] sm:$0xff] }
   0x2   :  { %v984_v1 = vld [vmem:[%s1310_s1 + $0x78] sm:$0xff]  ;;  %451 = vmatpush.bf16.msra.mxu0 %v976_v0  ;;  %v983_v4 = vld [vmem:[%s1310_s1 + $0x70] sm:$0xff]  ;;  %v982_v9 = vld [vmem:[%s1310_s1 + $0x68] sm:$0xff] }
   0x3   :  { %v992_v2 = vld [vmem:[%s1310_s1 + $0xb8] sm:$0xff]  ;;  %464 = vmatpush.bf16.msra.mxu1 %v984_v1  ;;  %v991_v5 = vld [vmem:[%s1310_s1 + $0xb0] sm:$0xff]  ;;  %v990_v10 = vld [vmem:[%s1310_s1 + $0xa8] sm:$0xff] }
   0x4   :  { %477 = vmatpush.bf16.msra.mxu2 %v992_v2  ;;  %v1000_v6 = vld [vmem:[%s1310_s1 + $0xf8] sm:$0xff]  ;;  %v999_v7 = vld [vmem:[%s1310_s1 + $0xf0] sm:$0xff]  ;;  %v998_v11 = vld [vmem:[%s1310_s1 + $0xe8] sm:$0xff] }
   0x5   :  { %490 = vmatpush.bf16.msra.mxu3 %v1000_v6  ;;  %v973_v12 = vld [vmem:[%s1310_s1 + $0x20] sm:$0xff]  ;;  %v972_v17 = vld [vmem:[%s1310_s1 + $0x18] sm:$0xff] }
   0x6   :  { %452 = vmatpush.bf16.msra.mxu0 %v975_v3  ;;  %v981_v13 = vld [vmem:[%s1310_s1 + $0x60] sm:$0xff]  ;;  %v980_v18 = vld [vmem:[%s1310_s1 + $0x58] sm:$0xff] }
   0x7   :  { %465 = vmatpush.bf16.msra.mxu1 %v983_v4  ;;  %v989_v14 = vld [vmem:[%s1310_s1 + $0xa0] sm:$0xff]  ;;  %v988_v19 = vld [vmem:[%s1310_s1 + $0x98] sm:$0xff] }
   0x8   :  { %478 = vmatpush.bf16.msra.mxu2 %v991_v5  ;;  %v28_v15 = vld [vmem:[%s1309_s0] sm:$0x7f] }
   0x9   :  { %491 = vmatpush.bf16.msra.mxu3 %v999_v7  ;;  %134 = vst [vmem:[#allocation1] ss:$9 sm:$0xff] %v28_v15  ;;  %v997_v16 = vld [vmem:[%s1310_s1 + $0xe0] sm:$0xff] }
   0xa   :  { %453 = vmatpush.bf16.msra.mxu0 %v974_v8 }
   0xb   :  { %466 = vmatpush.bf16.msra.mxu1 %v982_v9 }
   0xc   :  { %479 = vmatpush.bf16.msra.mxu2 %v990_v10 }
   0xd   :  { %492 = vmatpush.bf16.msra.mxu3 %v998_v11 }
   0xe   :  { %454 = vmatpush.bf16.msra.mxu0 %v973_v12 }
   0xf   :  { %467 = vmatpush.bf16.msra.mxu1 %v981_v13 }
  0x10   :  { %480 = vmatpush.bf16.msra.mxu2 %v989_v14 }
  0x11   :  { %12 = vsyncpa [#allocation3], 0  ;;  %493 = vmatpush.bf16.msra.mxu3 %v997_v16  ;;  %v996_v20 = vld [vmem:[%s1310_s1 + $0xd8] sm:$0xff]  ;;  %v971_v21 = vld [vmem:[%s1310_s1 + $0x10] sm:$0xff]  ;;  %vm448_vm0 = vcmask 261120   ;;  %vm612_vm1 = vcmask 1043456  }
  0x12   :  { %455 = vmatpush.bf16.msra.mxu0 %v972_v17  ;;  %v979_v22 = vld [vmem:[%s1310_s1 + $0x50] sm:$0xff]  ;;  %v970_v25 = vld [vmem:[%s1310_s1 + $0x8] sm:$0xff]  ;;  %v969_v29 = vld [vmem:[%s1310_s1] sm:$0xff]  ;;  %vm683_vm2 = vcmask 1041408   ;;  %vm608_vm3 = vcmask 982016   ;;  %vm679_vm4 = vcmask 687104  }
  0x13   :  { %468 = vmatpush.bf16.msra.mxu1 %v980_v18  ;;  %v987_v23 = vld [vmem:[%s1310_s1 + $0x90] sm:$0xff]  ;;  %v978_v26 = vld [vmem:[%s1310_s1 + $0x48] sm:$0xff]  ;;  %v977_v30 = vld [vmem:[%s1310_s1 + $0x40] sm:$0xff]  ;;  %s1061_s14 = smov [#allocation2]   ;;  %s709_s17 = sshll.u32 %s1316_s7, 4  ;;  %vm700_vm5 = vcmask 74752   ;;  %s710_s17 = int_to_ptr.hbm [resolvable:$true] %s709_s17 }
  0x14   :  { %481 = vmatpush.bf16.msra.mxu2 %v988_v19  ;;  %v995_v24 = vld [vmem:[%s1310_s1 + $0xd0] sm:$0xff]  ;;  %v986_v27 = vld [vmem:[%s1310_s1 + $0x88] sm:$0xff]  ;;  %v1008_v31 = vld [vmem:[%s1310_s1 + $0x138] sm:$0xff]  ;;  %s707_s15 = sshll.u32 %s1061_s14, 4  ;;  %s708_s15 = int_to_ptr.vmem [resolvable:$true] %s707_s15 }
  0x15   :  { %494 = vmatpush.bf16.msra.mxu3 %v996_v20  ;;  %v994_v28 = vld [vmem:[%s1310_s1 + $0xc8] sm:$0xff]  ;;  %v1016_v32 = vld [vmem:[%s1310_s1 + $0x178] sm:$0xff]  ;;  %v985_v33 = vld [vmem:[%s1310_s1 + $0x80] sm:$0xff] }
  0x16   :  { %456 = vmatpush.bf16.msra.mxu0 %v971_v21  ;;  %v993_v34 = vld [vmem:[%s1310_s1 + $0xc0] sm:$0xff]  ;;  %v136_v36 = vld [vmem:[#allocation1 + $0x9] sm:$0xff]  ;;  %v137_v40 = vld [vmem:[#allocation1 + $0x12] sm:$0xff] }
  0x17   :  { %469 = vmatpush.bf16.msra.mxu1 %v979_v22  ;;  %v135_v35 = vld [vmem:[#allocation1] sm:$0xff]  ;;  %v1018_v37 = vld [vmem:[%s1310_s1 + $0x188] sm:$0xff]  ;;  %v1007_v38 = vld [vmem:[%s1310_s1 + $0x130] sm:$0xff] }
  0x18   :  { %482 = vmatpush.bf16.msra.mxu2 %v987_v23  ;;  %v1015_v39 = vld [vmem:[%s1310_s1 + $0x170] sm:$0xff]  ;;  %v138_v41 = vld [vmem:[#allocation1 + $0x1b] sm:$0xff]  ;;  %v1006_v43 = vld [vmem:[%s1310_s1 + $0x128] sm:$0xff] }
  0x19   :  { %495 = vmatpush.bf16.msra.mxu3 %v995_v24  ;;  %v1017_v42 = vld [vmem:[%s1310_s1 + $0x180] sm:$0xff]  ;;  %v1014_v44 = vld [vmem:[%s1310_s1 + $0x168] sm:$0xff]  ;;  %v1004_v47 = vld [vmem:[%s1310_s1 + $0x118] sm:$0xff] }
  0x1a   :  { %457 = vmatpush.bf16.msra.mxu0 %v970_v25  ;;  %v1005_v45 = vld [vmem:[%s1310_s1 + $0x120] sm:$0xff]  ;;  %v1012_v48 = vld [vmem:[%s1310_s1 + $0x158] sm:$0xff]  ;;  %v1003_v49 = vld [vmem:[%s1310_s1 + $0x110] sm:$0xff] }
  0x1b   :  { %470 = vmatpush.bf16.msra.mxu1 %v978_v26  ;;  %v1013_v46 = vld [vmem:[%s1310_s1 + $0x160] sm:$0xff]  ;;  %v1011_v50 = vld [vmem:[%s1310_s1 + $0x150] sm:$0xff]  ;;  %v1002_v52 = vld [vmem:[%s1310_s1 + $0x108] sm:$0xff] }
  0x1c   :  { %483 = vmatpush.bf16.msra.mxu2 %v986_v27  ;;  %v141_v51 = vld [vmem:[#allocation1 + $0x36] sm:$0xff]  ;;  %v1010_v53 = vld [vmem:[%s1310_s1 + $0x148] sm:$0xff]  ;;  %v1001_v54 = vld [vmem:[%s1310_s1 + $0x100] sm:$0xff] }
  0x1d   :  { %496 = vmatpush.bf16.msra.mxu3 %v994_v28  ;;  %v1009_v55 = vld [vmem:[%s1310_s1 + $0x140] sm:$0xff]  ;;  %v140_v57 = vld [vmem:[#allocation1 + $0x2d] sm:$0xff]  ;;  %v558_v58 = vld [vmem:[%s1312_s3 + $0x38] sm:$0xf] }
  0x1e   :  { %458 = vmatpush.bf16.msra.mxu0 %v969_v29  ;;  %v139_v56 = vld [vmem:[#allocation1 + $0x24] sm:$0xff]  ;;  %v592_v59 = vunpack.c.l.b16 %v558_v58  ;;  %v1025_v62 = vld [vmem:[%s1312_s3 + $0x30] sm:$0xff]  ;;  %v1022_v1 = vld [vmem:[%s1312_s3 + $0x18] sm:$0xff] }
  0x1f   :  { %471 = vmatpush.bf16.msra.mxu1 %v977_v30  ;;  %v1024_v63 = vld [vmem:[%s1312_s3 + $0x28] sm:$0xff]  ;;  %v1023_v0 = vld [vmem:[%s1312_s3 + $0x20] sm:$0xff]  ;;  %v1021_v2 = vld [vmem:[%s1312_s3 + $0x10] sm:$0xff] }
  0x20   :  { %484 = vmatpush.bf16.msra.mxu2 %v985_v33  ;;  %v600_v60 = vpack.c.b16 %v592_v59, %v592_v59  ;;  %v1020_v3 = vld [vmem:[%s1312_s3 + $0x8] sm:$0xff]  ;;  %v1019_v6 = vld [vmem:[%s1312_s3] sm:$0xff]  ;;  %v1029_v20 = vld [vmem:[%s1314_s5 + $0x18] sm:$0xff] }
  0x21   :  { %459 = vmatmul.bf16.vlgmr.msra.gmra.mxu0 %v135_v35  ;;  %497 = vmatpush.bf16.msra.mxu3 %v993_v34  ;;  %v641_v9 = vld [vmem:[%s1314_s5 + $0x28] sm:$0x3]  ;;  %v1032_v14 = vld [vmem:[%s1311_s2] ss:$0 sm:$0xff]  ;;  %v1028_v22 = vld [vmem:[%s1314_s5 + $0x10] sm:$0xff] }
  0x22   :  { %503 = vmatpush.bf16.msrb.mxu0 %v1008_v31  ;;  %472 = vmatmul.bf16.vlgmr.msra.gmra.mxu1 %v136_v36  ;;  %v614_v61 = vsel %vm612_vm1, %v600_v60, 0  ;;  %v667_v11 = vunpack.c.l.b16 %v641_v9  ;;  %v1030_v16 = vld [vmem:[%s1314_s5 + $0x20] sm:$0xff]  ;;  %v1027_v36 = vld [vmem:[%s1314_s5 + $0x8] sm:$0xff] }
  0x23   :  { %516 = vmatpush.bf16.msrb.mxu1 %v1016_v32  ;;  %485 = vmatmul.bf16.vlgmr.msra.gmra.mxu2 %v137_v40 }
  0x24   :  { %535 = vmatpush.bf16.msrb.mxu2 %v1018_v37  ;;  %498 = vmatmul.bf16.vlgmr.msra.gmra.mxu3 %v138_v41  ;;  %v673_v13 = vpack.c.b16 %v667_v11, %v667_v11  ;;  %v1026_v37 = vld [vmem:[%s1314_s5] sm:$0xff] }
  0x25   :  { %616 = vmatpush.bf16.msrb.mxu3 %v614_v61 }
  0x26   :  { %504 = vmatpush.bf16.msrb.mxu0 %v1007_v38  ;;  %v685_v15 = vsel %vm683_vm2, %v673_v13, 0  ;;  %v1033_v38 = vld [vmem:[%s1313_s4] ss:$0 sm:$0xff] }
  0x27   :  { %517 = vmatpush.bf16.msrb.mxu1 %v1015_v39 }
  0x28   :  { %536 = vmatpush.bf16.msrb.mxu2 %v1017_v42 }
  0x29   :  { %617 = vmatpush.bf16.msrb.mxu3 %v1025_v62 }
  0x2a   :  { %505 = vmatpush.bf16.msrb.mxu0 %v1006_v43 }
  0x2b   :  { %518 = vmatpush.bf16.msrb.mxu1 %v1014_v44  ;;  %v1034_v44 = vld [vmem:[%s1315_s6] ss:$0 sm:$0xff] }
  0x2c   :  { %689 = vmatpush.bf16.msra.mxu2 %v685_v15 }
  0x2d   :  { %618 = vmatpush.bf16.msrb.mxu3 %v1024_v63 }
  0x2e   :  { %506 = vmatpush.bf16.msrb.mxu0 %v1005_v45 }
  0x2f   :  { %519 = vmatpush.bf16.msrb.mxu1 %v1013_v46 }
  0x30   :  { %690 = vmatpush.bf16.msra.mxu2 %v1030_v16 }
  0x31   :  { %619 = vmatpush.bf16.msrb.mxu3 %v1023_v0 }
  0x32   :  { %507 = vmatpush.bf16.msrb.mxu0 %v1004_v47 }
  0x33   :  { %520 = vmatpush.bf16.msrb.mxu1 %v1012_v48  ;;  %918 = vmatmul.msk.bf16.vlgmr.msrb.gmra.mxu2 %vm448_vm0, %v141_v51 }
  0x34   :  { %691 = vmatpush.bf16.msra.mxu2 %v1029_v20 }
  0x35   :  { %620 = vmatpush.bf16.msrb.mxu3 %v1022_v1 }
  0x36   :  { %508 = vmatpush.bf16.msrb.mxu0 %v1003_v49 }
  0x37   :  { %521 = vmatpush.bf16.msrb.mxu1 %v1011_v50 }
  0x38   :  { %692 = vmatpush.bf16.msra.mxu2 %v1028_v22 }
  0x39   :  { %621 = vmatpush.bf16.msrb.mxu3 %v1021_v2 }
  0x3a   :  { %509 = vmatpush.bf16.msrb.mxu0 %v1002_v52 }
  0x3b   :  { %522 = vmatpush.bf16.msrb.mxu1 %v1010_v53 }
  0x3c   :  { %693 = vmatpush.bf16.msra.mxu2 %v1027_v36 }
  0x3d   :  { %622 = vmatpush.bf16.msrb.mxu3 %v1020_v3 }
  0x3e   :  { %510 = vmatpush.bf16.msrb.mxu0 %v1001_v54 }
  0x3f   :  { %523 = vmatpush.bf16.msrb.mxu1 %v1009_v55 }
  0x40   :  { %694 = vmatpush.bf16.msra.mxu2 %v1026_v37 }
  0x41   :  { %511 = vmatmul.bf16.vlgmr.msrb.gmra.mxu0 %v139_v56  ;;  %623 = vmatpush.bf16.msrb.mxu3 %v1019_v6 }
  0x42   :  { %524 = vmatmul.bf16.vlgmr.msrb.gmra.mxu1 %v140_v57 }
  0x9e   :  { %v460_v4 = vpop.f32.mrf.mxu0 }
  0x9f   :  { %v473_v5 = vpop.f32.mrf.mxu1  ;;  %v461_v17 = vadd.f32 %v1032_v14, %v460_v4 }
  0xa1   :  { %v474_v21 = vadd.f32 %v473_v5, %v461_v17 }
  0xa6   :  { %v462_v7 = vpop.f32.mrf.mxu0  ;;  %v486_v10 = vpop.f32.mrf.mxu2 }
  0xa7   :  { %v475_v8 = vpop.f32.mrf.mxu1  ;;  %v499_v12 = vpop.f32.mrf.mxu3  ;;  %v487_v23 = vadd.f32 %v486_v10, %v474_v21 }
  0xa9   :  { %v500_v25 = vadd.f32 %v499_v12, %v487_v23 }
  0xae   :  { %v488_v18 = vpop.f32.mrf.mxu2 }
  0xaf   :  { %v501_v19 = vpop.f32.mrf.mxu3 }
  0xb6   :  { %v538_v24 = vpop.f32.mrf.mxu2 }
  0xbe   :  { %v512_v26 = vpop.f32.mrf.mxu0  ;;  %v540_v30 = vpop.f32.mrf.mxu2 }
  0xbf   :  { %v525_v27 = vpop.f32.mrf.mxu1  ;;  %v513_v28 = vadd.f32 %v512_v26, %v500_v25 }
  0xc1   :  { %v526_v29 = vadd.f32 %v525_v27, %v513_v28 }
  0xc3   :  { %v539_v31 = vadd.f32 %v538_v24, %v526_v29 }
  0xc5   :  { %v542_v32 = vmax.f32 %v539_v31, 0.0 }
  0xc6   :  { %v514_v33 = vpop.f32.mrf.mxu0 }
  0xc7   :  { %v527_v34 = vpop.f32.mrf.mxu1  ;;  %v543_v35 = vpack.c.bf16 %v542_v32, %v542_v32 }
  0xc9   :  { %947 = vmatmul.msk.bf16.vlgmr.msrb.gmra.mxu3 %vm608_vm3, %v543_v35 }
 0x14c   :  { %v625_v39 = vpop.f32.mrf.mxu3 }
 0x14d   :  { %v626_v40 = vadd.f32 %v1033_v38, %v625_v39 }
 0x14f   :  { %v629_v41 = vmax.f32 %v626_v40, 0.0 }
 0x151   :  { %v630_v42 = vpack.c.bf16 %v629_v41, %v629_v41 }
 0x153   :  { %968 = vmatmul.msk.bf16.vlgmr.msra.gmra.mxu2 %vm679_vm4, %v630_v42 }
 0x154   :  { %v627_v43 = vpop.f32.mrf.mxu3 }
 0x1d6   :  { %v696_v45 = vpop.f32.mrf.mxu2 }
 0x1d7   :  { %v697_v46 = vadd.f32 %v1034_v44, %v696_v45 }
 0x1d9   :  { %701 = vst.msk [vmem:[#allocation2] sm:$0x3] %vm700_vm5, %v697_v46 }
 0x1da   :  { %712 = dma.vmem_to_hbm [thread:$0]  %s708_s15, 32, %s710_s17, [#allocation3]  }
 0x1de   :  { %v698_v47 = vpop.f32.mrf.mxu2 }
 0x1df   :  { %1059 = dma.done.wait [#allocation3], 32  }
 0x1e0   :  { %1060 = vsyncadd [#allocation3], 4294967264 }
 0x1e1   :  { %717 = vsyncpa [#allocation3], 1 }

</bundles_post_ra>
